<compile_context>
chip_gen: v5e
topology: v5e:2x2
jax: 0.10.0
libtpu: 0.0.40
codegen_flags: <defaults>
</compile_context>

<pallas_src>
import jax
import jax.numpy as jnp
from jax import lax
from jax.experimental import pallas as pl
from jax.experimental.pallas import tpu as pltpu

W2V = 300            # self.w2v_vec_size
W2V_PAD = 384        # K padded to a multiple of 128 lanes
HIDDEN = 128         # self.hiddenSize
GATES = 4 * HIDDEN   # 512, PyTorch gate order (i, f, g, o)
NUM_CLASSES = 2


def lstm_logsoftmax_kernel(x_ref, wih_t_ref, whh_t_ref, b_ref,
                           wfc_t_ref, bfc_ref, out_ref, xw_ref):
    """Per-grid-step (one sequence per grid step):
      x_ref:     (1, seq, 384) bf16   zero-padded w2v inputs
      wih_t_ref: (384, 512)    bf16   input->gate weights (transposed, K-padded)
      whh_t_ref: (128, 512)    bf16   hidden->gate weights (transposed)
      b_ref:     (1, 512)      f32    b_ih + b_hh
      wfc_t_ref: (128, 2)      f32    fc1 weights (transposed)
      bfc_ref:   (1, 2)        f32    fc1 bias
      out_ref:   (1, 1, 2)     f32    log-probabilities
      xw_ref:    (seq, 512)    f32    scratch: hoisted input projection
    """
    seq_len = x_ref.shape[1]

    # Hoisted input projection for the whole sequence: a single M=seq bf16 MXU
    # matmul with f32 accumulation, instead of one M=1 matmul per timestep.
    xw_ref[...] = jnp.dot(x_ref[0], wih_t_ref[...],
                          preferred_element_type=jnp.float32) + b_ref[...]

    def step(t, carry):
        h, c = carry                                            # (1,128) f32 each
        gates = xw_ref[pl.ds(t, 1), :] + jnp.dot(
            h.astype(jnp.bfloat16), whh_t_ref[...],
            preferred_element_type=jnp.float32)                 # (1, 512) f32
        i = jax.nn.sigmoid(gates[:, 0 * HIDDEN:1 * HIDDEN])
        f = jax.nn.sigmoid(gates[:, 1 * HIDDEN:2 * HIDDEN])
        g = jnp.tanh(gates[:, 2 * HIDDEN:3 * HIDDEN])
        o = jax.nn.sigmoid(gates[:, 3 * HIDDEN:4 * HIDDEN])
        c_new = f * c + i * g
        h_new = o * jnp.tanh(c_new)
        return (h_new, c_new)

    h0 = jnp.zeros((1, HIDDEN), jnp.float32)
    c0 = jnp.zeros((1, HIDDEN), jnp.float32)
    # seq_len is static: fully unroll so the LLO scheduler can overlap timesteps.
    h, _ = lax.fori_loop(0, seq_len, step, (h0, c0), unroll=True)

    # fc1 + LogSoftmax(dim=1) — tiny f32 head, done once.
    logits = jnp.dot(h, wfc_t_ref[...],
                     preferred_element_type=jnp.float32) + bfc_ref[...]   # (1, 2)
    m = jnp.max(logits, axis=1, keepdims=True)
    lse = jnp.log(jnp.sum(jnp.exp(logits - m), axis=1, keepdims=True)) + m
    out_ref[0] = logits - lse


def init_params(key):
    """Deterministic PyTorch-style init: U(-k, k), k = 1/sqrt(hidden)."""
    k = 1.0 / jnp.sqrt(jnp.float32(HIDDEN))
    ks = jax.random.split(key, 6)
    w_ih = jax.random.uniform(ks[0], (4 * HIDDEN, W2V), jnp.float32, -k, k)
    w_hh = jax.random.uniform(ks[1], (4 * HIDDEN, HIDDEN), jnp.float32, -k, k)
    b_ih = jax.random.uniform(ks[2], (4 * HIDDEN,), jnp.float32, -k, k)
    b_hh = jax.random.uniform(ks[3], (4 * HIDDEN,), jnp.float32, -k, k)
    w_fc = jax.random.uniform(ks[4], (NUM_CLASSES, HIDDEN), jnp.float32, -k, k)
    b_fc = jax.random.uniform(ks[5], (NUM_CLASSES,), jnp.float32, -k, k)
    return dict(w_ih=w_ih, w_hh=w_hh, b_ih=b_ih, b_hh=b_hh, w_fc=w_fc, b_fc=b_fc)


def neural_network_forward_batched(x_batch, params):
    """x_batch: (B, seq, 300) f32 -> (B, 2) log-probabilities.

    One pallas_call, grid over sequences. Weights use constant index_maps so
    they are DMA'd once and stay resident in VMEM across grid steps; the batch
    axis is marked "parallel" (megacore on v7x).
    """
    B, seq_len, w2v = x_batch.shape
    assert w2v == W2V

    # Pad K 300 -> 384 and cast MXU operands to bf16 (f32 accumulate in-kernel).
    x_pad = jnp.pad(x_batch, ((0, 0), (0, 0), (0, W2V_PAD - W2V))).astype(jnp.bfloat16)
    wih_t = jnp.pad(params["w_ih"].T,
                    ((0, W2V_PAD - W2V), (0, 0))).astype(jnp.bfloat16)   # (384, 512)
    whh_t = params["w_hh"].T.astype(jnp.bfloat16)                        # (128, 512)
    b = (params["b_ih"] + params["b_hh"]).reshape(1, -1)                 # (1, 512) f32
    wfc_t = params["w_fc"].T.astype(jnp.float32)                         # (128, 2)
    bfc = params["b_fc"].reshape(1, -1)                                  # (1, 2)

    out = pl.pallas_call(
        lstm_logsoftmax_kernel,
        out_shape=jax.ShapeDtypeStruct((B, 1, NUM_CLASSES), jnp.float32),
        grid_spec=pltpu.PrefetchScalarGridSpec(
            num_scalar_prefetch=0,
            grid=(B,),
            in_specs=[
                pl.BlockSpec((1, seq_len, W2V_PAD), lambda i: (i, 0, 0)),
                pl.BlockSpec((W2V_PAD, GATES), lambda i: (0, 0)),
                pl.BlockSpec((HIDDEN, GATES), lambda i: (0, 0)),
                pl.BlockSpec((1, GATES), lambda i: (0, 0)),
                pl.BlockSpec((HIDDEN, NUM_CLASSES), lambda i: (0, 0)),
                pl.BlockSpec((1, NUM_CLASSES), lambda i: (0, 0)),
            ],
            out_specs=pl.BlockSpec((1, 1, NUM_CLASSES), lambda i: (i, 0, 0)),
            scratch_shapes=[pltpu.VMEM((seq_len, GATES), jnp.float32)],
        ),
        compiler_params=pltpu.CompilerParams(
            dimension_semantics=("parallel",)),
    )(x_pad, wih_t, whh_t, b, wfc_t, bfc)
    return out.reshape(B, NUM_CLASSES)


def neural_network_forward(x, params):
    """Single sequence, matching the module's forward: (seq, 300) -> (1, 2)."""
    return neural_network_forward_batched(x[None], params)


def reference_forward(x, params, bf16_weights=True):
    """Pure-JAX reference for one sequence. With bf16_weights=True, the MXU
    operands (weights, x, h) are rounded through bf16 to emulate the kernel's
    bf16-matmul / f32-accumulate numerics; with False it is the exact f32 model."""
    def rd(a):
        return a.astype(jnp.bfloat16).astype(jnp.float32) if bf16_weights else a
    wih_t = rd(params["w_ih"].T)                          # (300, 512)
    whh_t = rd(params["w_hh"].T)                          # (128, 512)
    b = (params["b_ih"] + params["b_hh"]).reshape(1, -1)
    xw = rd(x) @ wih_t + b                                # (seq, 512)
    h = jnp.zeros((1, HIDDEN), jnp.float32)
    c = jnp.zeros((1, HIDDEN), jnp.float32)
    for t in range(x.shape[0]):
        gates = xw[t:t + 1] + rd(h) @ whh_t
        i = jax.nn.sigmoid(gates[:, 0 * HIDDEN:1 * HIDDEN])
        f = jax.nn.sigmoid(gates[:, 1 * HIDDEN:2 * HIDDEN])
        g = jnp.tanh(gates[:, 2 * HIDDEN:3 * HIDDEN])
        o = jax.nn.sigmoid(gates[:, 3 * HIDDEN:4 * HIDDEN])
        c = f * c + i * g
        h = o * jnp.tanh(c)
    logits = h @ params["w_fc"].T + params["b_fc"].reshape(1, -1)
    return jax.nn.log_softmax(logits, axis=1)


if __name__ == "__main__":
    key = jax.random.PRNGKey(0)
    k_param, k_x = jax.random.split(key)
    params = init_params(k_param)

    batch, seq_len = 2, 8
    x_batch = jax.random.normal(k_x, (batch, seq_len, W2V), jnp.float32)

    # Batched (gridded) path.
    out = neural_network_forward_batched(x_batch, params)
    out = jax.block_until_ready(out)
    assert out.shape == (batch, NUM_CLASSES)

    for bi in range(batch):
        ref_bf = reference_forward(x_batch[bi], params, bf16_weights=True)
        ref_f32 = reference_forward(x_batch[bi], params, bf16_weights=False)
        # Tight check vs. the bf16-emulating reference (same numerics as kernel).
        assert jnp.allclose(out[bi:bi + 1], ref_bf, atol=5e-3, rtol=5e-3), (
            out[bi], ref_bf)
        # Loose check vs. the exact fp32 model (bf16 weight rounding is tiny here).
        assert jnp.allclose(out[bi:bi + 1], ref_f32, atol=1e-1, rtol=1e-1), (
            out[bi], ref_f32)

    # Single-sequence path matching the module's forward signature exactly.
    out1 = neural_network_forward(x_batch[0], params)
    out1 = jax.block_until_ready(out1)
    assert out1.shape == (1, NUM_CLASSES)
    assert jnp.allclose(out1, out[0:1], atol=1e-5)

    print("KERNEL_OK")
</pallas_src>

<mosaic_0001>
module attributes {stable_mosaic.version = 11 : i64} {
  func.func @lstm_logsoftmax_kernel(%arg0: i32, %arg1: memref<1x8x384xbf16, #tpu.memory_space<vmem>>, %arg2: memref<384x512xbf16, #tpu.memory_space<vmem>>, %arg3: memref<128x512xbf16, #tpu.memory_space<vmem>>, %arg4: memref<1x512xf32, #tpu.memory_space<vmem>>, %arg5: memref<128x2xf32, #tpu.memory_space<vmem>>, %arg6: memref<1x2xf32, #tpu.memory_space<vmem>>, %arg7: memref<1x1x2xf32, #tpu.memory_space<vmem>>, %arg8: memref<8x512xf32, #tpu.memory_space<vmem>>) attributes {dimension_semantics = [#tpu.dimension_semantics<parallel>], iteration_bounds = array<i64: 2>, scalar_prefetch = 0 : i64, scratch_operands = 1 : i64, tpu.core_type = #tpu.core_type<tc>, window_params = [{transform_indices = @transform_0, window_bounds = array<i64: 1, 8, 384>}, {pipeline_mode = #tpu.pipeline_mode<synchronous>, transform_indices = @transform_1, window_bounds = array<i64: 384, 512>}, {pipeline_mode = #tpu.pipeline_mode<synchronous>, transform_indices = @transform_2, window_bounds = array<i64: 128, 512>}, {pipeline_mode = #tpu.pipeline_mode<synchronous>, transform_indices = @transform_3, window_bounds = array<i64: 1, 512>}, {pipeline_mode = #tpu.pipeline_mode<synchronous>, transform_indices = @transform_4, window_bounds = array<i64: 128, 2>}, {pipeline_mode = #tpu.pipeline_mode<synchronous>, transform_indices = @transform_5, window_bounds = array<i64: 1, 2>}, {transform_indices = @transform_6, window_bounds = array<i64: 1, 1, 2>}]} {
    %c0 = arith.constant 0 : index
    %c0_0 = arith.constant 0 : index
    %c0_1 = arith.constant 0 : index
    %0 = vector.load %arg1[%c0, %c0_0, %c0_1] : memref<1x8x384xbf16, #tpu.memory_space<vmem>>, vector<1x8x384xbf16>
    %1 = vector.shape_cast %0 : vector<1x8x384xbf16> to vector<8x384xbf16>
    %c0_2 = arith.constant 0 : index
    %c0_3 = arith.constant 0 : index
    %2 = vector.load %arg2[%c0_2, %c0_3] : memref<384x512xbf16, #tpu.memory_space<vmem>>, vector<384x512xbf16>
    %cst = arith.constant dense<0.000000e+00> : vector<8x512xf32>
    %3 = tpu.matmul %1, %2, %cst {dimension_numbers = #tpu.dot_dimension_numbers<[1], [0], [0], [1], [0, 0, 1, 1], [], []>} : vector<8x384xbf16>, vector<384x512xbf16>, vector<8x512xf32> -> vector<8x512xf32>
    %c0_4 = arith.constant 0 : index
    %c0_5 = arith.constant 0 : index
    %4 = vector.load %arg4[%c0_4, %c0_5] : memref<1x512xf32, #tpu.memory_space<vmem>>, vector<1x512xf32>
    %5 = vector.broadcast %4 : vector<1x512xf32> to vector<8x512xf32>
    %6 = arith.addf %3, %5 : vector<8x512xf32>
    %c0_6 = arith.constant 0 : index
    %c0_7 = arith.constant 0 : index
    %7 = vector.load %arg8[%c0_6, %c0_7] : memref<8x512xf32, #tpu.memory_space<vmem>>, vector<8x512xf32>
    tpu.vector_store %arg8[%c0_6, %c0_7], %6 {strides = array<i32>} : memref<8x512xf32, #tpu.memory_space<vmem>>, vector<8x512xf32>,
    %cst_8 = arith.constant 0.000000e+00 : f32
    %8 = vector.broadcast %cst_8 : f32 to vector<1x128xf32>
    %cst_9 = arith.constant 0.000000e+00 : f32
    %9 = vector.broadcast %cst_9 : f32 to vector<1x128xf32>
    %c0_i32 = arith.constant 0 : i32
    %10 = arith.index_cast %c0_i32 : i32 to index
    %c0_10 = arith.constant 0 : index
    %11 = vector.load %arg8[%10, %c0_10] : memref<8x512xf32, #tpu.memory_space<vmem>>, vector<1x512xf32>
    %12 = arith.truncf %8 : vector<1x128xf32> to vector<1x128xbf16>
    %c0_11 = arith.constant 0 : index
    %c0_12 = arith.constant 0 : index
    %13 = vector.load %arg3[%c0_11, %c0_12] : memref<128x512xbf16, #tpu.memory_space<vmem>>, vector<128x512xbf16>
    %cst_13 = arith.constant dense<0.000000e+00> : vector<1x512xf32>
    %14 = tpu.matmul %12, %13, %cst_13 {dimension_numbers = #tpu.dot_dimension_numbers<[1], [0], [0], [1], [0, 0, 1, 1], [], []>} : vector<1x128xbf16>, vector<128x512xbf16>, vector<1x512xf32> -> vector<1x512xf32>
    %15 = arith.addf %11, %14 : vector<1x512xf32>
    %16 = vector.extract_strided_slice %15 {offsets = [0, 0], sizes = [1, 128], strides = [1, 1]} : vector<1x512xf32> to vector<1x128xf32>
    %17 = arith.negf %16 : vector<1x128xf32>
    %18 = math.exp %17 : vector<1x128xf32>
    %cst_14 = arith.constant 1.000000e+00 : f32
    %19 = vector.broadcast %cst_14 : f32 to vector<1x128xf32>
    %20 = arith.addf %19, %18 : vector<1x128xf32>
    %21 = arith.divf %19, %20 : vector<1x128xf32>
    %22 = vector.extract_strided_slice %15 {offsets = [0, 128], sizes = [1, 128], strides = [1, 1]} : vector<1x512xf32> to vector<1x128xf32>
    %23 = arith.negf %22 : vector<1x128xf32>
    %24 = math.exp %23 : vector<1x128xf32>
    %cst_15 = arith.constant 1.000000e+00 : f32
    %25 = vector.broadcast %cst_15 : f32 to vector<1x128xf32>
    %26 = arith.addf %25, %24 : vector<1x128xf32>
    %27 = arith.divf %25, %26 : vector<1x128xf32>
    %28 = vector.extract_strided_slice %15 {offsets = [0, 256], sizes = [1, 128], strides = [1, 1]} : vector<1x512xf32> to vector<1x128xf32>
    %29 = math.tanh %28 : vector<1x128xf32>
    %30 = vector.extract_strided_slice %15 {offsets = [0, 384], sizes = [1, 128], strides = [1, 1]} : vector<1x512xf32> to vector<1x128xf32>
    %31 = arith.negf %30 : vector<1x128xf32>
    %32 = math.exp %31 : vector<1x128xf32>
    %cst_16 = arith.constant 1.000000e+00 : f32
    %33 = vector.broadcast %cst_16 : f32 to vector<1x128xf32>
    %34 = arith.addf %33, %32 : vector<1x128xf32>
    %35 = arith.divf %33, %34 : vector<1x128xf32>
    %36 = arith.mulf %27, %9 : vector<1x128xf32>
    %37 = arith.mulf %21, %29 : vector<1x128xf32>
    %38 = arith.addf %36, %37 : vector<1x128xf32>
    %39 = math.tanh %38 : vector<1x128xf32>
    %40 = arith.mulf %35, %39 : vector<1x128xf32>
    %c1_i32 = arith.constant 1 : i32
    %41 = arith.index_cast %c1_i32 : i32 to index
    %c0_17 = arith.constant 0 : index
    %42 = vector.load %arg8[%41, %c0_17] : memref<8x512xf32, #tpu.memory_space<vmem>>, vector<1x512xf32>
    %43 = arith.truncf %40 : vector<1x128xf32> to vector<1x128xbf16>
    %c0_18 = arith.constant 0 : index
    %c0_19 = arith.constant 0 : index
    %44 = vector.load %arg3[%c0_18, %c0_19] : memref<128x512xbf16, #tpu.memory_space<vmem>>, vector<128x512xbf16>
    %cst_20 = arith.constant dense<0.000000e+00> : vector<1x512xf32>
    %45 = tpu.matmul %43, %44, %cst_20 {dimension_numbers = #tpu.dot_dimension_numbers<[1], [0], [0], [1], [0, 0, 1, 1], [], []>} : vector<1x128xbf16>, vector<128x512xbf16>, vector<1x512xf32> -> vector<1x512xf32>
    %46 = arith.addf %42, %45 : vector<1x512xf32>
    %47 = vector.extract_strided_slice %46 {offsets = [0, 0], sizes = [1, 128], strides = [1, 1]} : vector<1x512xf32> to vector<1x128xf32>
    %48 = arith.negf %47 : vector<1x128xf32>
    %49 = math.exp %48 : vector<1x128xf32>
    %cst_21 = arith.constant 1.000000e+00 : f32
    %50 = vector.broadcast %cst_21 : f32 to vector<1x128xf32>
    %51 = arith.addf %50, %49 : vector<1x128xf32>
    %52 = arith.divf %50, %51 : vector<1x128xf32>
    %53 = vector.extract_strided_slice %46 {offsets = [0, 128], sizes = [1, 128], strides = [1, 1]} : vector<1x512xf32> to vector<1x128xf32>
    %54 = arith.negf %53 : vector<1x128xf32>
    %55 = math.exp %54 : vector<1x128xf32>
    %cst_22 = arith.constant 1.000000e+00 : f32
    %56 = vector.broadcast %cst_22 : f32 to vector<1x128xf32>
    %57 = arith.addf %56, %55 : vector<1x128xf32>
    %58 = arith.divf %56, %57 : vector<1x128xf32>
    %59 = vector.extract_strided_slice %46 {offsets = [0, 256], sizes = [1, 128], strides = [1, 1]} : vector<1x512xf32> to vector<1x128xf32>
    %60 = math.tanh %59 : vector<1x128xf32>
    %61 = vector.extract_strided_slice %46 {offsets = [0, 384], sizes = [1, 128], strides = [1, 1]} : vector<1x512xf32> to vector<1x128xf32>
    %62 = arith.negf %61 : vector<1x128xf32>
    %63 = math.exp %62 : vector<1x128xf32>
    %cst_23 = arith.constant 1.000000e+00 : f32
    %64 = vector.broadcast %cst_23 : f32 to vector<1x128xf32>
    %65 = arith.addf %64, %63 : vector<1x128xf32>
    %66 = arith.divf %64, %65 : vector<1x128xf32>
    %67 = arith.mulf %58, %38 : vector<1x128xf32>
    %68 = arith.mulf %52, %60 : vector<1x128xf32>
    %69 = arith.addf %67, %68 : vector<1x128xf32>
    %70 = math.tanh %69 : vector<1x128xf32>
    %71 = arith.mulf %66, %70 : vector<1x128xf32>
    %c2_i32 = arith.constant 2 : i32
    %72 = arith.index_cast %c2_i32 : i32 to index
    %c0_24 = arith.constant 0 : index
    %73 = vector.load %arg8[%72, %c0_24] : memref<8x512xf32, #tpu.memory_space<vmem>>, vector<1x512xf32>
    %74 = arith.truncf %71 : vector<1x128xf32> to vector<1x128xbf16>
    %c0_25 = arith.constant 0 : index
    %c0_26 = arith.constant 0 : index
    %75 = vector.load %arg3[%c0_25, %c0_26] : memref<128x512xbf16, #tpu.memory_space<vmem>>, vector<128x512xbf16>
    %cst_27 = arith.constant dense<0.000000e+00> : vector<1x512xf32>
    %76 = tpu.matmul %74, %75, %cst_27 {dimension_numbers = #tpu.dot_dimension_numbers<[1], [0], [0], [1], [0, 0, 1, 1], [], []>} : vector<1x128xbf16>, vector<128x512xbf16>, vector<1x512xf32> -> vector<1x512xf32>
    %77 = arith.addf %73, %76 : vector<1x512xf32>
    %78 = vector.extract_strided_slice %77 {offsets = [0, 0], sizes = [1, 128], strides = [1, 1]} : vector<1x512xf32> to vector<1x128xf32>
    %79 = arith.negf %78 : vector<1x128xf32>
    %80 = math.exp %79 : vector<1x128xf32>
    %cst_28 = arith.constant 1.000000e+00 : f32
    %81 = vector.broadcast %cst_28 : f32 to vector<1x128xf32>
    %82 = arith.addf %81, %80 : vector<1x128xf32>
    %83 = arith.divf %81, %82 : vector<1x128xf32>
    %84 = vector.extract_strided_slice %77 {offsets = [0, 128], sizes = [1, 128], strides = [1, 1]} : vector<1x512xf32> to vector<1x128xf32>
    %85 = arith.negf %84 : vector<1x128xf32>
    %86 = math.exp %85 : vector<1x128xf32>
    %cst_29 = arith.constant 1.000000e+00 : f32
    %87 = vector.broadcast %cst_29 : f32 to vector<1x128xf32>
    %88 = arith.addf %87, %86 : vector<1x128xf32>
    %89 = arith.divf %87, %88 : vector<1x128xf32>
    %90 = vector.extract_strided_slice %77 {offsets = [0, 256], sizes = [1, 128], strides = [1, 1]} : vector<1x512xf32> to vector<1x128xf32>
    %91 = math.tanh %90 : vector<1x128xf32>
    %92 = vector.extract_strided_slice %77 {offsets = [0, 384], sizes = [1, 128], strides = [1, 1]} : vector<1x512xf32> to vector<1x128xf32>
    %93 = arith.negf %92 : vector<1x128xf32>
    %94 = math.exp %93 : vector<1x128xf32>
    %cst_30 = arith.constant 1.000000e+00 : f32
    %95 = vector.broadcast %cst_30 : f32 to vector<1x128xf32>
    %96 = arith.addf %95, %94 : vector<1x128xf32>
    %97 = arith.divf %95, %96 : vector<1x128xf32>
    %98 = arith.mulf %89, %69 : vector<1x128xf32>
    %99 = arith.mulf %83, %91 : vector<1x128xf32>
    %100 = arith.addf %98, %99 : vector<1x128xf32>
    %101 = math.tanh %100 : vector<1x128xf32>
    %102 = arith.mulf %97, %101 : vector<1x128xf32>
    %c3_i32 = arith.constant 3 : i32
    %103 = arith.index_cast %c3_i32 : i32 to index
    %c0_31 = arith.constant 0 : index
    %104 = vector.load %arg8[%103, %c0_31] : memref<8x512xf32, #tpu.memory_space<vmem>>, vector<1x512xf32>
    %105 = arith.truncf %102 : vector<1x128xf32> to vector<1x128xbf16>
    %c0_32 = arith.constant 0 : index
    %c0_33 = arith.constant 0 : index
    %106 = vector.load %arg3[%c0_32, %c0_33] : memref<128x512xbf16, #tpu.memory_space<vmem>>, vector<128x512xbf16>
    %cst_34 = arith.constant dense<0.000000e+00> : vector<1x512xf32>
    %107 = tpu.matmul %105, %106, %cst_34 {dimension_numbers = #tpu.dot_dimension_numbers<[1], [0], [0], [1], [0, 0, 1, 1], [], []>} : vector<1x128xbf16>, vector<128x512xbf16>, vector<1x512xf32> -> vector<1x512xf32>
    %108 = arith.addf %104, %107 : vector<1x512xf32>
    %109 = vector.extract_strided_slice %108 {offsets = [0, 0], sizes = [1, 128], strides = [1, 1]} : vector<1x512xf32> to vector<1x128xf32>
    %110 = arith.negf %109 : vector<1x128xf32>
    %111 = math.exp %110 : vector<1x128xf32>
    %cst_35 = arith.constant 1.000000e+00 : f32
    %112 = vector.broadcast %cst_35 : f32 to vector<1x128xf32>
    %113 = arith.addf %112, %111 : vector<1x128xf32>
    %114 = arith.divf %112, %113 : vector<1x128xf32>
    %115 = vector.extract_strided_slice %108 {offsets = [0, 128], sizes = [1, 128], strides = [1, 1]} : vector<1x512xf32> to vector<1x128xf32>
    %116 = arith.negf %115 : vector<1x128xf32>
    %117 = math.exp %116 : vector<1x128xf32>
    %cst_36 = arith.constant 1.000000e+00 : f32
    %118 = vector.broadcast %cst_36 : f32 to vector<1x128xf32>
    %119 = arith.addf %118, %117 : vector<1x128xf32>
    %120 = arith.divf %118, %119 : vector<1x128xf32>
    %121 = vector.extract_strided_slice %108 {offsets = [0, 256], sizes = [1, 128], strides = [1, 1]} : vector<1x512xf32> to vector<1x128xf32>
    %122 = math.tanh %121 : vector<1x128xf32>
    %123 = vector.extract_strided_slice %108 {offsets = [0, 384], sizes = [1, 128], strides = [1, 1]} : vector<1x512xf32> to vector<1x128xf32>
    %124 = arith.negf %123 : vector<1x128xf32>
    %125 = math.exp %124 : vector<1x128xf32>
    %cst_37 = arith.constant 1.000000e+00 : f32
    %126 = vector.broadcast %cst_37 : f32 to vector<1x128xf32>
    %127 = arith.addf %126, %125 : vector<1x128xf32>
    %128 = arith.divf %126, %127 : vector<1x128xf32>
    %129 = arith.mulf %120, %100 : vector<1x128xf32>
    %130 = arith.mulf %114, %122 : vector<1x128xf32>
    %131 = arith.addf %129, %130 : vector<1x128xf32>
    %132 = math.tanh %131 : vector<1x128xf32>
    %133 = arith.mulf %128, %132 : vector<1x128xf32>
    %c4_i32 = arith.constant 4 : i32
    %134 = arith.index_cast %c4_i32 : i32 to index
    %c0_38 = arith.constant 0 : index
    %135 = vector.load %arg8[%134, %c0_38] : memref<8x512xf32, #tpu.memory_space<vmem>>, vector<1x512xf32>
    %136 = arith.truncf %133 : vector<1x128xf32> to vector<1x128xbf16>
    %c0_39 = arith.constant 0 : index
    %c0_40 = arith.constant 0 : index
    %137 = vector.load %arg3[%c0_39, %c0_40] : memref<128x512xbf16, #tpu.memory_space<vmem>>, vector<128x512xbf16>
    %cst_41 = arith.constant dense<0.000000e+00> : vector<1x512xf32>
    %138 = tpu.matmul %136, %137, %cst_41 {dimension_numbers = #tpu.dot_dimension_numbers<[1], [0], [0], [1], [0, 0, 1, 1], [], []>} : vector<1x128xbf16>, vector<128x512xbf16>, vector<1x512xf32> -> vector<1x512xf32>
    %139 = arith.addf %135, %138 : vector<1x512xf32>
    %140 = vector.extract_strided_slice %139 {offsets = [0, 0], sizes = [1, 128], strides = [1, 1]} : vector<1x512xf32> to vector<1x128xf32>
    %141 = arith.negf %140 : vector<1x128xf32>
    %142 = math.exp %141 : vector<1x128xf32>
    %cst_42 = arith.constant 1.000000e+00 : f32
    %143 = vector.broadcast %cst_42 : f32 to vector<1x128xf32>
    %144 = arith.addf %143, %142 : vector<1x128xf32>
    %145 = arith.divf %143, %144 : vector<1x128xf32>
    %146 = vector.extract_strided_slice %139 {offsets = [0, 128], sizes = [1, 128], strides = [1, 1]} : vector<1x512xf32> to vector<1x128xf32>
    %147 = arith.negf %146 : vector<1x128xf32>
    %148 = math.exp %147 : vector<1x128xf32>
    %cst_43 = arith.constant 1.000000e+00 : f32
    %149 = vector.broadcast %cst_43 : f32 to vector<1x128xf32>
    %150 = arith.addf %149, %148 : vector<1x128xf32>
    %151 = arith.divf %149, %150 : vector<1x128xf32>
    %152 = vector.extract_strided_slice %139 {offsets = [0, 256], sizes = [1, 128], strides = [1, 1]} : vector<1x512xf32> to vector<1x128xf32>
    %153 = math.tanh %152 : vector<1x128xf32>
    %154 = vector.extract_strided_slice %139 {offsets = [0, 384], sizes = [1, 128], strides = [1, 1]} : vector<1x512xf32> to vector<1x128xf32>
    %155 = arith.negf %154 : vector<1x128xf32>
    %156 = math.exp %155 : vector<1x128xf32>
    %cst_44 = arith.constant 1.000000e+00 : f32
    %157 = vector.broadcast %cst_44 : f32 to vector<1x128xf32>
    %158 = arith.addf %157, %156 : vector<1x128xf32>
    %159 = arith.divf %157, %158 : vector<1x128xf32>
    %160 = arith.mulf %151, %131 : vector<1x128xf32>
    %161 = arith.mulf %145, %153 : vector<1x128xf32>
    %162 = arith.addf %160, %161 : vector<1x128xf32>
    %163 = math.tanh %162 : vector<1x128xf32>
    %164 = arith.mulf %159, %163 : vector<1x128xf32>
    %c5_i32 = arith.constant 5 : i32
    %165 = arith.index_cast %c5_i32 : i32 to index
    %c0_45 = arith.constant 0 : index
    %166 = vector.load %arg8[%165, %c0_45] : memref<8x512xf32, #tpu.memory_space<vmem>>, vector<1x512xf32>
    %167 = arith.truncf %164 : vector<1x128xf32> to vector<1x128xbf16>
    %c0_46 = arith.constant 0 : index
    %c0_47 = arith.constant 0 : index
    %168 = vector.load %arg3[%c0_46, %c0_47] : memref<128x512xbf16, #tpu.memory_space<vmem>>, vector<128x512xbf16>
    %cst_48 = arith.constant dense<0.000000e+00> : vector<1x512xf32>
    %169 = tpu.matmul %167, %168, %cst_48 {dimension_numbers = #tpu.dot_dimension_numbers<[1], [0], [0], [1], [0, 0, 1, 1], [], []>} : vector<1x128xbf16>, vector<128x512xbf16>, vector<1x512xf32> -> vector<1x512xf32>
    %170 = arith.addf %166, %169 : vector<1x512xf32>
    %171 = vector.extract_strided_slice %170 {offsets = [0, 0], sizes = [1, 128], strides = [1, 1]} : vector<1x512xf32> to vector<1x128xf32>
    %172 = arith.negf %171 : vector<1x128xf32>
    %173 = math.exp %172 : vector<1x128xf32>
    %cst_49 = arith.constant 1.000000e+00 : f32
    %174 = vector.broadcast %cst_49 : f32 to vector<1x128xf32>
    %175 = arith.addf %174, %173 : vector<1x128xf32>
    %176 = arith.divf %174, %175 : vector<1x128xf32>
    %177 = vector.extract_strided_slice %170 {offsets = [0, 128], sizes = [1, 128], strides = [1, 1]} : vector<1x512xf32> to vector<1x128xf32>
    %178 = arith.negf %177 : vector<1x128xf32>
    %179 = math.exp %178 : vector<1x128xf32>
    %cst_50 = arith.constant 1.000000e+00 : f32
    %180 = vector.broadcast %cst_50 : f32 to vector<1x128xf32>
    %181 = arith.addf %180, %179 : vector<1x128xf32>
    %182 = arith.divf %180, %181 : vector<1x128xf32>
    %183 = vector.extract_strided_slice %170 {offsets = [0, 256], sizes = [1, 128], strides = [1, 1]} : vector<1x512xf32> to vector<1x128xf32>
    %184 = math.tanh %183 : vector<1x128xf32>
    %185 = vector.extract_strided_slice %170 {offsets = [0, 384], sizes = [1, 128], strides = [1, 1]} : vector<1x512xf32> to vector<1x128xf32>
    %186 = arith.negf %185 : vector<1x128xf32>
    %187 = math.exp %186 : vector<1x128xf32>
    %cst_51 = arith.constant 1.000000e+00 : f32
    %188 = vector.broadcast %cst_51 : f32 to vector<1x128xf32>
    %189 = arith.addf %188, %187 : vector<1x128xf32>
    %190 = arith.divf %188, %189 : vector<1x128xf32>
    %191 = arith.mulf %182, %162 : vector<1x128xf32>
    %192 = arith.mulf %176, %184 : vector<1x128xf32>
    %193 = arith.addf %191, %192 : vector<1x128xf32>
    %194 = math.tanh %193 : vector<1x128xf32>
    %195 = arith.mulf %190, %194 : vector<1x128xf32>
    %c6_i32 = arith.constant 6 : i32
    %196 = arith.index_cast %c6_i32 : i32 to index
    %c0_52 = arith.constant 0 : index
    %197 = vector.load %arg8[%196, %c0_52] : memref<8x512xf32, #tpu.memory_space<vmem>>, vector<1x512xf32>
    %198 = arith.truncf %195 : vector<1x128xf32> to vector<1x128xbf16>
    %c0_53 = arith.constant 0 : index
    %c0_54 = arith.constant 0 : index
    %199 = vector.load %arg3[%c0_53, %c0_54] : memref<128x512xbf16, #tpu.memory_space<vmem>>, vector<128x512xbf16>
    %cst_55 = arith.constant dense<0.000000e+00> : vector<1x512xf32>
    %200 = tpu.matmul %198, %199, %cst_55 {dimension_numbers = #tpu.dot_dimension_numbers<[1], [0], [0], [1], [0, 0, 1, 1], [], []>} : vector<1x128xbf16>, vector<128x512xbf16>, vector<1x512xf32> -> vector<1x512xf32>
    %201 = arith.addf %197, %200 : vector<1x512xf32>
    %202 = vector.extract_strided_slice %201 {offsets = [0, 0], sizes = [1, 128], strides = [1, 1]} : vector<1x512xf32> to vector<1x128xf32>
    %203 = arith.negf %202 : vector<1x128xf32>
    %204 = math.exp %203 : vector<1x128xf32>
    %cst_56 = arith.constant 1.000000e+00 : f32
    %205 = vector.broadcast %cst_56 : f32 to vector<1x128xf32>
    %206 = arith.addf %205, %204 : vector<1x128xf32>
    %207 = arith.divf %205, %206 : vector<1x128xf32>
    %208 = vector.extract_strided_slice %201 {offsets = [0, 128], sizes = [1, 128], strides = [1, 1]} : vector<1x512xf32> to vector<1x128xf32>
    %209 = arith.negf %208 : vector<1x128xf32>
    %210 = math.exp %209 : vector<1x128xf32>
    %cst_57 = arith.constant 1.000000e+00 : f32
    %211 = vector.broadcast %cst_57 : f32 to vector<1x128xf32>
    %212 = arith.addf %211, %210 : vector<1x128xf32>
    %213 = arith.divf %211, %212 : vector<1x128xf32>
    %214 = vector.extract_strided_slice %201 {offsets = [0, 256], sizes = [1, 128], strides = [1, 1]} : vector<1x512xf32> to vector<1x128xf32>
    %215 = math.tanh %214 : vector<1x128xf32>
    %216 = vector.extract_strided_slice %201 {offsets = [0, 384], sizes = [1, 128], strides = [1, 1]} : vector<1x512xf32> to vector<1x128xf32>
    %217 = arith.negf %216 : vector<1x128xf32>
    %218 = math.exp %217 : vector<1x128xf32>
    %cst_58 = arith.constant 1.000000e+00 : f32
    %219 = vector.broadcast %cst_58 : f32 to vector<1x128xf32>
    %220 = arith.addf %219, %218 : vector<1x128xf32>
    %221 = arith.divf %219, %220 : vector<1x128xf32>
    %222 = arith.mulf %213, %193 : vector<1x128xf32>
    %223 = arith.mulf %207, %215 : vector<1x128xf32>
    %224 = arith.addf %222, %223 : vector<1x128xf32>
    %225 = math.tanh %224 : vector<1x128xf32>
    %226 = arith.mulf %221, %225 : vector<1x128xf32>
    %c7_i32 = arith.constant 7 : i32
    %227 = arith.index_cast %c7_i32 : i32 to index
    %c0_59 = arith.constant 0 : index
    %228 = vector.load %arg8[%227, %c0_59] : memref<8x512xf32, #tpu.memory_space<vmem>>, vector<1x512xf32>
    %229 = arith.truncf %226 : vector<1x128xf32> to vector<1x128xbf16>
    %c0_60 = arith.constant 0 : index
    %c0_61 = arith.constant 0 : index
    %230 = vector.load %arg3[%c0_60, %c0_61] : memref<128x512xbf16, #tpu.memory_space<vmem>>, vector<128x512xbf16>
    %cst_62 = arith.constant dense<0.000000e+00> : vector<1x512xf32>
    %231 = tpu.matmul %229, %230, %cst_62 {dimension_numbers = #tpu.dot_dimension_numbers<[1], [0], [0], [1], [0, 0, 1, 1], [], []>} : vector<1x128xbf16>, vector<128x512xbf16>, vector<1x512xf32> -> vector<1x512xf32>
    %232 = arith.addf %228, %231 : vector<1x512xf32>
    %233 = vector.extract_strided_slice %232 {offsets = [0, 0], sizes = [1, 128], strides = [1, 1]} : vector<1x512xf32> to vector<1x128xf32>
    %234 = arith.negf %233 : vector<1x128xf32>
    %235 = math.exp %234 : vector<1x128xf32>
    %cst_63 = arith.constant 1.000000e+00 : f32
    %236 = vector.broadcast %cst_63 : f32 to vector<1x128xf32>
    %237 = arith.addf %236, %235 : vector<1x128xf32>
    %238 = arith.divf %236, %237 : vector<1x128xf32>
    %239 = vector.extract_strided_slice %232 {offsets = [0, 128], sizes = [1, 128], strides = [1, 1]} : vector<1x512xf32> to vector<1x128xf32>
    %240 = arith.negf %239 : vector<1x128xf32>
    %241 = math.exp %240 : vector<1x128xf32>
    %cst_64 = arith.constant 1.000000e+00 : f32
    %242 = vector.broadcast %cst_64 : f32 to vector<1x128xf32>
    %243 = arith.addf %242, %241 : vector<1x128xf32>
    %244 = arith.divf %242, %243 : vector<1x128xf32>
    %245 = vector.extract_strided_slice %232 {offsets = [0, 256], sizes = [1, 128], strides = [1, 1]} : vector<1x512xf32> to vector<1x128xf32>
    %246 = math.tanh %245 : vector<1x128xf32>
    %247 = vector.extract_strided_slice %232 {offsets = [0, 384], sizes = [1, 128], strides = [1, 1]} : vector<1x512xf32> to vector<1x128xf32>
    %248 = arith.negf %247 : vector<1x128xf32>
    %249 = math.exp %248 : vector<1x128xf32>
    %cst_65 = arith.constant 1.000000e+00 : f32
    %250 = vector.broadcast %cst_65 : f32 to vector<1x128xf32>
    %251 = arith.addf %250, %249 : vector<1x128xf32>
    %252 = arith.divf %250, %251 : vector<1x128xf32>
    %253 = arith.mulf %244, %224 : vector<1x128xf32>
    %254 = arith.mulf %238, %246 : vector<1x128xf32>
    %255 = arith.addf %253, %254 : vector<1x128xf32>
    %256 = math.tanh %255 : vector<1x128xf32>
    %257 = arith.mulf %252, %256 : vector<1x128xf32>
    %c8_i32 = arith.constant 8 : i32
    %c0_66 = arith.constant 0 : index
    %c0_67 = arith.constant 0 : index
    %258 = vector.load %arg5[%c0_66, %c0_67] : memref<128x2xf32, #tpu.memory_space<vmem>>, vector<128x2xf32>
    %cst_68 = arith.constant dense<0.000000e+00> : vector<1x2xf32>
    %259 = tpu.matmul %257, %258, %cst_68 {dimension_numbers = #tpu.dot_dimension_numbers<[1], [0], [0], [1], [0, 0, 1, 1], [], []>} : vector<1x128xf32>, vector<128x2xf32>, vector<1x2xf32> -> vector<1x2xf32>
    %c0_69 = arith.constant 0 : index
    %c0_70 = arith.constant 0 : index
    %260 = vector.load %arg6[%c0_69, %c0_70] : memref<1x2xf32, #tpu.memory_space<vmem>>, vector<1x2xf32>
    %261 = arith.addf %259, %260 : vector<1x2xf32>
    %cst_71 = arith.constant dense<0xFF800000> : vector<1xf32>
    %262 = vector.multi_reduction <maximumf>, %261, %cst_71 [1] : vector<1x2xf32> to vector<1xf32>
    %263 = vector.shape_cast %262 : vector<1xf32> to vector<1x1xf32>
    %264 = vector.broadcast %263 : vector<1x1xf32> to vector<1x2xf32>
    %265 = arith.subf %261, %264 : vector<1x2xf32>
    %266 = math.exp %265 : vector<1x2xf32>
    %cst_72 = arith.constant dense<0.000000e+00> : vector<1xf32>
    %267 = vector.multi_reduction <add>, %266, %cst_72 [1] : vector<1x2xf32> to vector<1xf32>
    %268 = vector.shape_cast %267 : vector<1xf32> to vector<1x1xf32>
    %269 = math.log %268 : vector<1x1xf32>
    %270 = arith.addf %269, %263 : vector<1x1xf32>
    %271 = vector.broadcast %270 : vector<1x1xf32> to vector<1x2xf32>
    %272 = arith.subf %261, %271 : vector<1x2xf32>
    %c0_73 = arith.constant 0 : index
    %c0_74 = arith.constant 0 : index
    %c0_75 = arith.constant 0 : index
    %273 = vector.load %arg7[%c0_73, %c0_74, %c0_75] : memref<1x1x2xf32, #tpu.memory_space<vmem>>, vector<1x1x2xf32>
    %274 = vector.shape_cast %273 : vector<1x1x2xf32> to vector<1x2xf32>
    %275 = vector.shape_cast %272 : vector<1x2xf32> to vector<1x1x2xf32>
    tpu.vector_store %arg7[%c0_73, %c0_74, %c0_75], %275 {strides = array<i32>} : memref<1x1x2xf32, #tpu.memory_space<vmem>>, vector<1x1x2xf32>,
    return
  }
  func.func @transform_0(%arg0: i32) -> (i32, i32, i32) {
    %c0_i32 = arith.constant 0 : i32
    %c0_i32_0 = arith.constant 0 : i32
    %c0_i32_1 = arith.constant 0 : i32
    return %arg0, %c0_i32, %c0_i32_0 : i32, i32, i32
  }
  func.func @transform_1(%arg0: i32) -> (i32, i32) {
    %c0_i32 = arith.constant 0 : i32
    %c0_i32_0 = arith.constant 0 : i32
    %c0_i32_1 = arith.constant 0 : i32
    return %c0_i32, %c0_i32_0 : i32, i32
  }
  func.func @transform_2(%arg0: i32) -> (i32, i32) {
    %c0_i32 = arith.constant 0 : i32
    %c0_i32_0 = arith.constant 0 : i32
    %c0_i32_1 = arith.constant 0 : i32
    return %c0_i32, %c0_i32_0 : i32, i32
  }
  func.func @transform_3(%arg0: i32) -> (i32, i32) {
    %c0_i32 = arith.constant 0 : i32
    %c0_i32_0 = arith.constant 0 : i32
    %c0_i32_1 = arith.constant 0 : i32
    return %c0_i32, %c0_i32_0 : i32, i32
  }
  func.func @transform_4(%arg0: i32) -> (i32, i32) {
    %c0_i32 = arith.constant 0 : i32
    %c0_i32_0 = arith.constant 0 : i32
    %c0_i32_1 = arith.constant 0 : i32
    return %c0_i32, %c0_i32_0 : i32, i32
  }
  func.func @transform_5(%arg0: i32) -> (i32, i32) {
    %c0_i32 = arith.constant 0 : i32
    %c0_i32_0 = arith.constant 0 : i32
    %c0_i32_1 = arith.constant 0 : i32
    return %c0_i32, %c0_i32_0 : i32, i32
  }
  func.func @transform_6(%arg0: i32) -> (i32, i32, i32) {
    %c0_i32 = arith.constant 0 : i32
    %c0_i32_0 = arith.constant 0 : i32
    %c0_i32_1 = arith.constant 0 : i32
    return %arg0, %c0_i32, %c0_i32_0 : i32, i32, i32
  }
}

</mosaic_0001>

<bundles_post_ra>
// kernel: tpu_custom_call.1
= control target key start
LH: loop header
LB: loop body
LE: loop exit
PB: predicated region body
PF: predicated region fallthrough
CT: control target
= control target key end

     0   :  { %11 = vsyncpa [#allocation4], 0  ;;  %s4079_s0 = inlined_call_operand.vmem [shape: bf16[2,8,384], index: 0, kind: input, shape index: {}]   ;;  %s4080_s1 = inlined_call_operand.hbm [shape: bf16[384,512], index: 1, kind: input, shape index: {}]   ;;  %s4081_s2 = inlined_call_operand.hbm [shape: bf16[128,512], index: 2, kind: input, shape index: {}]   ;;  %s4082_s3 = inlined_call_operand.vmem [shape: f32[1,512], index: 3, kind: input, shape index: {}]   ;;  %s4083_s4 = inlined_call_operand.vmem [shape: f32[128,2], index: 4, kind: input, shape index: {}]   ;;  %s4084_s5 = inlined_call_operand.vmem [shape: f32[1,2], index: 5, kind: input, shape index: {}]   ;;  %s4085_s6 = inlined_call_operand.hbm [shape: f32[2,1,2], index: 6, kind: output, shape index: {}]  }
   0x1   :  { %12 = vsyncpa [#allocation7], 0 }
   0x2   :  { %13 = vsyncpa [#allocation5], 0 }
   0x3   :  { %15 = vsyncpa [#allocation5 + $0x1], 0  ;;  %s3517_s21 = smov 0   ;;  %s3519_s22 = smov 0  }
   0x4   :  { %s3521_s23 = smov 0   ;;  %s3523_s24 = smov 0  }
   0x5 LB: > { %s3538_s25 = sadd.s32 4294967295, %s3475_s24   ;;  %s2474_s26 = sadd.s32 4294967294, %s3475_s24   ;;  %s3475_s24 = sphi %s3523_s24, %s4092_s24   ;;  %s3471_s23 = sphi %s3521_s23, %s4091_s23   ;;  %s3467_s22 = sphi %s3519_s22, %s4090_s22   ;;  %s3463_s21 = sphi %s3517_s21, %s4089_s21  }
   0x6   : > { %s3542_s27 = sadd.s32 1, %s3475_s24   ;;  %s159_s28 = sadd.s32 1, %s3471_s23 }
   0x7   : > { %s156_s29 = ssub.s32 %s3475_s24, %s3542_s27  ;;  %p169_p0 = scmp.ne.s32.totalorder %s3471_s23, %s3467_s22 }
   0x8   : > { %p157_p1 = scmp.eq.s32.totalorder %s156_s29, 0  ;;  %p170_p2 = scmp.eq.s32.totalorder %s3538_s25, 1 }
   0x9   : > { %p175_p3 = scmp.ne.s32.totalorder %s3467_s22, %s3463_s21  ;;  %p176_p4 = scmp.eq.s32.totalorder %s2474_s26, 1 }
   0xa   : > { %s3553_s30 = scalar_select %p157_p1, %s3471_s23, %s159_s28  }
   0xb   : > { %p3555_p5 = por %p170_p2, %p169_p0  ;;  %p3559_p6 = por %p176_p4, %p175_p3 }
   0xc   : > { %p2475_p7 = scmp.ge.s32.totalorder %s3475_s24, 1  ;;  %p183_p8 = scmp.lt.s32.totalorder %s3475_s24, 3 }
   0xd   : > { %p3171_p9 = scmp.eq.s32.totalorder %s3538_s25, 0  ;;  %s194_s12 = sshll.u32 %s4080_s1, 4  ;;  %s195_s12 = int_to_ptr.hbm [resolvable:$true] %s194_s12 }
   0xe   : > { %p3566_p10 = pnand %p2475_p7, %p183_p8  ;;  %s3477_s13 = smov [#allocation3]  }
   0xf   : > { %s196_s14 = sshll.u32 %s3477_s13, 4  ;;  %s208_s17 = sshll.u32 %s4081_s2, 4  ;;  %s197_s14 = int_to_ptr.vmem [resolvable:$true] %s196_s14  ;;  %s209_s17 = int_to_ptr.hbm [resolvable:$true] %s208_s17 }
  0x10   : > { %p3160_p11 = pneg %p3566_p10  ;;  %s3478_s18 = smov 256  }
  0x11   : > { %s3479_s19 = smov 16   ;;  %s3480_s20 = smov [#allocation6]  }
  0x12   : > { %p3161_p12 = pnand %p3171_p9, %p3160_p11  ;;  %s210_s26 = sshll.u32 %s3480_s20, 4  ;;  %s211_s26 = int_to_ptr.vmem [resolvable:$true] %s210_s26 }
  0x13   : > { %243 = sbr.rel (%p3566_p10) target bundleno = 2018 (0x7e2), region = 44 }
  0x14   : > { %3163 = dma.hbm_to_vmem [thread:$0]  (!%p3161_p12), %s195_s12, 12288, %s197_s14, [#allocation4], %s3478_s18, %s3478_s18, %s3479_s19  }
  0x15   : > { %3166 = dma.hbm_to_vmem [thread:$0]  (!%p3161_p12), %s209_s17, 4096, %s211_s26, [#allocation7], %s3478_s18, %s3478_s18, %s3479_s19  }
  0x18   : > { %3450 = dma.done.wait (%p3171_p9), [#allocation4], 12288  }
  0x19   : > { %3452 = vsyncadd (%p3171_p9), [#allocation4], 4294955008 }
  0x1a   : > { %3454 = dma.done.wait (%p3171_p9), [#allocation7], 4096  }
  0x1b   : > { %3456 = vsyncadd (%p3171_p9), [#allocation7], 4294963200  ;;  %v2597_v0 = vld [vmem:[#allocation3 + $0xe0] sm:$0xf]  ;;  %v3051_v1 = vld [vmem:[#allocation3 + $0xec] sm:$0xf0]  ;;  %s2393_s26 = scalar_lea.hbm %s4085_s6, %s3538_s25 }
  0x1c   : > { %v2725_v2 = vld [vmem:[#allocation3 + $0x1e0] sm:$0xf]  ;;  %v2598_v3 = vor.u32 %v3051_v1, %v2597_v0  ;;  %v3083_v4 = vld [vmem:[#allocation3 + $0x1ec] sm:$0xf0]  ;;  %v3049_v9 = vld [vmem:[#allocation3 + $0xe4] sm:$0xf] }
  0x1d   : > { %v2853_v5 = vld [vmem:[#allocation3 + $0x2e0] sm:$0xf]  ;;  %v3115_v6 = vld [vmem:[#allocation3 + $0x2ec] sm:$0xf0]  ;;  %v2726_v7 = vor.u32 %v3083_v4, %v2725_v2  ;;  %v2599_v10 = vld [vmem:[#allocation3 + $0xf0] sm:$0xf0] }
  0x1e   : > { %v2854_v8 = vor.u32 %v3115_v6, %v2853_v5  ;;  %v2581_v11 = vld [vmem:[#allocation3 + $0xc0] sm:$0xf]  ;;  %883 = vmatpush.bf16.msra.mxu0 %v2598_v3  ;;  %v2602_v12 = vor.u32 %v3049_v9, %v2599_v10  ;;  %v3047_v13 = vld [vmem:[#allocation3 + $0xcc] sm:$0xf0]  ;;  %v3045_v20 = vld [vmem:[#allocation3 + $0xc4] sm:$0xf] }
  0x1f   : > { %v2709_v14 = vld [vmem:[#allocation3 + $0x1c0] sm:$0xf]  ;;  %v3079_v15 = vld [vmem:[#allocation3 + $0x1cc] sm:$0xf0]  ;;  %896 = vmatpush.bf16.msra.mxu1 %v2726_v7  ;;  %v2582_v16 = vor.u32 %v3047_v13, %v2581_v11  ;;  %v2583_v22 = vld [vmem:[#allocation3 + $0xd0] sm:$0xf0] }
  0x20   : > { %909 = vmatpush.bf16.msra.mxu2 %v2854_v8  ;;  %v2710_v17 = vor.u32 %v3079_v15, %v2709_v14  ;;  %v2837_v18 = vld [vmem:[#allocation3 + $0x2c0] sm:$0xf]  ;;  %v3111_v19 = vld [vmem:[#allocation3 + $0x2cc] sm:$0xf0]  ;;  %922 = vmatpush.bf16.msra.mxu3 %v2602_v12  ;;  %v2586_v25 = vor.u32 %v3045_v20, %v2583_v22  ;;  %v3041_v31 = vld [vmem:[#allocation3 + $0xa4] sm:$0xf] }
  0x21   : > { %v2838_v21 = vor.u32 %v3111_v19, %v2837_v18  ;;  %v2565_v23 = vld [vmem:[#allocation3 + $0xa0] sm:$0xf]  ;;  %v3043_v24 = vld [vmem:[#allocation3 + $0xac] sm:$0xf0]  ;;  %v2567_v32 = vld [vmem:[#allocation3 + $0xb0] sm:$0xf0] }
  0x22   : > { %v2693_v26 = vld [vmem:[#allocation3 + $0x1a0] sm:$0xf]  ;;  %v3075_v27 = vld [vmem:[#allocation3 + $0x1ac] sm:$0xf0]  ;;  %884 = vmatpush.bf16.msra.mxu0 %v2582_v16  ;;  %v2566_v29 = vor.u32 %v3043_v24, %v2565_v23  ;;  %v2570_v38 = vor.u32 %v3041_v31, %v2567_v32  ;;  %v3037_v42 = vld [vmem:[#allocation3 + $0x84] sm:$0xf] }
  0x23   : > { %v2821_v28 = vld [vmem:[#allocation3 + $0x2a0] sm:$0xf]  ;;  %v3107_v30 = vld [vmem:[#allocation3 + $0x2ac] sm:$0xf0]  ;;  %897 = vmatpush.bf16.msra.mxu1 %v2710_v17  ;;  %v2694_v33 = vor.u32 %v3075_v27, %v2693_v26  ;;  %v2551_v43 = vld [vmem:[#allocation3 + $0x90] sm:$0xf0] }
  0x24   : > { %910 = vmatpush.bf16.msra.mxu2 %v2838_v21  ;;  %v2822_v34 = vor.u32 %v3107_v30, %v2821_v28  ;;  %v2549_v35 = vld [vmem:[#allocation3 + $0x80] sm:$0xf]  ;;  %v3039_v36 = vld [vmem:[#allocation3 + $0x8c] sm:$0xf0]  ;;  %923 = vmatpush.bf16.msra.mxu3 %v2586_v25  ;;  %v2554_v50 = vor.u32 %v3037_v42, %v2551_v43  ;;  %v3033_v54 = vld [vmem:[#allocation3 + $0x64] sm:$0xf] }
  0x25   : > { %v2677_v37 = vld [vmem:[#allocation3 + $0x180] sm:$0xf]  ;;  %v3071_v39 = vld [vmem:[#allocation3 + $0x18c] sm:$0xf0]  ;;  %v2550_v44 = vor.u32 %v3039_v36, %v2549_v35  ;;  %v2535_v55 = vld [vmem:[#allocation3 + $0x70] sm:$0xf0] }
  0x26   : > { %v2805_v40 = vld [vmem:[#allocation3 + $0x280] sm:$0xf]  ;;  %v3103_v41 = vld [vmem:[#allocation3 + $0x28c] sm:$0xf0]  ;;  %885 = vmatpush.bf16.msra.mxu0 %v2566_v29  ;;  %v2678_v45 = vor.u32 %v3071_v39, %v2677_v37  ;;  %v2538_v62 = vor.u32 %v3033_v54, %v2535_v55  ;;  %v3029_v2 = vld [vmem:[#allocation3 + $0x44] sm:$0xf] }
  0x27   : > { %898 = vmatpush.bf16.msra.mxu1 %v2694_v33  ;;  %v2806_v46 = vor.u32 %v3103_v41, %v2805_v40  ;;  %v2533_v47 = vld [vmem:[#allocation3 + $0x60] sm:$0xf]  ;;  %v3035_v48 = vld [vmem:[#allocation3 + $0x6c] sm:$0xf0]  ;;  %v2519_v3 = vld [vmem:[#allocation3 + $0x50] sm:$0xf0] }
  0x28   : > { %911 = vmatpush.bf16.msra.mxu2 %v2822_v34  ;;  %v2661_v49 = vld [vmem:[#allocation3 + $0x160] sm:$0xf]  ;;  %924 = vmatpush.bf16.msra.mxu3 %v2570_v38  ;;  %v3067_v51 = vld [vmem:[#allocation3 + $0x16c] sm:$0xf0]  ;;  %v2534_v56 = vor.u32 %v3035_v48, %v2533_v47  ;;  %p278_p13 = scmp.lt.s32.totalorder %s3538_s25, 1  ;;  %v2522_v10 = vor.u32 %v3029_v2, %v2519_v3  ;;  %vm1295_vm0 = vcmask 1040384  }
  0x29   : > { %v2789_v52 = vld [vmem:[#allocation3 + $0x260] sm:$0xf]  ;;  %v3099_v53 = vld [vmem:[#allocation3 + $0x26c] sm:$0xf0]  ;;  %v2662_v57 = vor.u32 %v3067_v51, %v2661_v49  ;;  %v3025_v14 = vld [vmem:[#allocation3 + $0x24] sm:$0xf] }
  0x2a   : > { %886 = vmatpush.bf16.msra.mxu0 %v2550_v44  ;;  %v2790_v58 = vor.u32 %v3099_v53, %v2789_v52  ;;  %v2517_v59 = vld [vmem:[#allocation3 + $0x40] sm:$0xf]  ;;  %v3031_v60 = vld [vmem:[#allocation3 + $0x4c] sm:$0xf0]  ;;  %v2503_v15 = vld [vmem:[#allocation3 + $0x30] sm:$0xf0] }
  0x2b   : > { %899 = vmatpush.bf16.msra.mxu1 %v2678_v45  ;;  %v2645_v61 = vld [vmem:[#allocation3 + $0x140] sm:$0xf]  ;;  %v3063_v63 = vld [vmem:[#allocation3 + $0x14c] sm:$0xf0]  ;;  %v2518_v4 = vor.u32 %v3031_v60, %v2517_v59  ;;  %s3594_s28 = scalar_select %p278_p13, %s3538_s25, 1  ;;  %v2506_v24 = vor.u32 %v3025_v14, %v2503_v15  ;;  %vm1297_vm1 = vcmask 1042434  }
  0x2c   : > { %912 = vmatpush.bf16.msra.mxu2 %v2806_v46  ;;  %925 = vmatpush.bf16.msra.mxu3 %v2554_v50  ;;  %v2773_v0 = vld [vmem:[#allocation3 + $0x240] sm:$0xf]  ;;  %v3095_v1 = vld [vmem:[#allocation3 + $0x24c] sm:$0xf0]  ;;  %v2646_v5 = vor.u32 %v3063_v63, %v2645_v61  ;;  %v3021_v26 = vld [vmem:[#allocation3 + $0x4] sm:$0xf] }
  0x2d   : > { %v2774_v6 = vor.u32 %v3095_v1, %v2773_v0  ;;  %v2501_v7 = vld [vmem:[#allocation3 + $0x20] sm:$0xf]  ;;  %v3027_v8 = vld [vmem:[#allocation3 + $0x2c] sm:$0xf0]  ;;  %v2487_v27 = vld [vmem:[#allocation3 + $0x10] sm:$0xf0] }
  0x2e   : > { %887 = vmatpush.bf16.msra.mxu0 %v2534_v56  ;;  %v2629_v9 = vld [vmem:[#allocation3 + $0x120] sm:$0xf]  ;;  %v3059_v11 = vld [vmem:[#allocation3 + $0x12c] sm:$0xf0]  ;;  %v2502_v16 = vor.u32 %v3027_v8, %v2501_v7  ;;  %v3081_v28 = vld [vmem:[#allocation3 + $0x1e4] sm:$0xf]  ;;  %v2490_v39 = vor.u32 %v3021_v26, %v2487_v27 }
  0x2f   : > { %900 = vmatpush.bf16.msra.mxu1 %v2662_v57  ;;  %v2757_v12 = vld [vmem:[#allocation3 + $0x220] sm:$0xf]  ;;  %v3091_v13 = vld [vmem:[#allocation3 + $0x22c] sm:$0xf0]  ;;  %v2630_v19 = vor.u32 %v3059_v11, %v2629_v9  ;;  %v2727_v29 = vld [vmem:[#allocation3 + $0x1f0] sm:$0xf0] }
  0x30   : > { %913 = vmatpush.bf16.msra.mxu2 %v2790_v58  ;;  %926 = vmatpush.bf16.msra.mxu3 %v2538_v62  ;;  %v2485_v17 = vld [vmem:[#allocation3] sm:$0xf]  ;;  %v3023_v18 = vld [vmem:[#allocation3 + $0xc] sm:$0xf0]  ;;  %v2758_v20 = vor.u32 %v3091_v13, %v2757_v12  ;;  %v3113_v30 = vld [vmem:[#allocation3 + $0x2e4] sm:$0xf]  ;;  %v2730_v40 = vor.u32 %v3081_v28, %v2727_v29 }
  0x31   : > { %v2613_v21 = vld [vmem:[#allocation3 + $0x100] sm:$0xf]  ;;  %v3055_v22 = vld [vmem:[#allocation3 + $0x10c] sm:$0xf0]  ;;  %v2486_v31 = vor.u32 %v3023_v18, %v2485_v17  ;;  %v2855_v32 = vld [vmem:[#allocation3 + $0x2f0] sm:$0xf0] }
  0x32   : > { %888 = vmatpush.bf16.msra.mxu0 %v2518_v4  ;;  %v2741_v23 = vld [vmem:[#allocation3 + $0x200] sm:$0xf]  ;;  %v3087_v25 = vld [vmem:[#allocation3 + $0x20c] sm:$0xf0]  ;;  %v2605_v33 = vld [vmem:[#allocation3 + $0xe8] sm:$0xf]  ;;  %v2614_v35 = vor.u32 %v3055_v22, %v2613_v21  ;;  %v2858_v41 = vor.u32 %v3113_v30, %v2855_v32 }
  0x33   : > { %901 = vmatpush.bf16.msra.mxu1 %v2646_v5  ;;  %v3052_v34 = vld [vmem:[#allocation3 + $0xf4] sm:$0xf0]  ;;  %v2742_v36 = vor.u32 %v3087_v25, %v2741_v23  ;;  %v2733_v37 = vld [vmem:[#allocation3 + $0x1e8] sm:$0xf]  ;;  %s3149_s29 = smul.u32 12, %s3594_s28  ;;  %vm1299_vm2 = vcmask 1041408  }
  0x34   : > { %914 = vmatpush.bf16.msra.mxu2 %v2774_v6  ;;  %927 = vmatpush.bf16.msra.mxu3 %v2522_v10  ;;  %v3084_v38 = vld [vmem:[#allocation3 + $0x1f4] sm:$0xf0]  ;;  %v2606_v42 = vor.u32 %v3052_v34, %v2605_v33  ;;  %v3077_v43 = vld [vmem:[#allocation3 + $0x1c4] sm:$0xf]  ;;  %v2711_v44 = vld [vmem:[#allocation3 + $0x1d0] sm:$0xf0] }
  0x35   : > { %v3109_v45 = vld [vmem:[#allocation3 + $0x2c4] sm:$0xf]  ;;  %v2734_v46 = vor.u32 %v3084_v38, %v2733_v37  ;;  %v2839_v47 = vld [vmem:[#allocation3 + $0x2d0] sm:$0xf0]  ;;  %v2589_v48 = vld [vmem:[#allocation3 + $0xc8] sm:$0xf]  ;;  %v2714_v52 = vor.u32 %v3077_v43, %v2711_v44  ;;  %s282_s11 = scalar_lea.vmem %s4079_s0, %s3149_s29 }
  0x36   : > { %889 = vmatpush.bf16.msra.mxu0 %v2502_v16  ;;  %v3048_v49 = vld [vmem:[#allocation3 + $0xd4] sm:$0xf0]  ;;  %v2717_v50 = vld [vmem:[#allocation3 + $0x1c8] sm:$0xf]  ;;  %v3073_v53 = vld [vmem:[#allocation3 + $0x1a4] sm:$0xf]  ;;  %v2842_v54 = vor.u32 %v3109_v45, %v2839_v47 }
  0x37   : > { %902 = vmatpush.bf16.msra.mxu1 %v2630_v19  ;;  %v3080_v51 = vld [vmem:[#allocation3 + $0x1d4] sm:$0xf0]  ;;  %v2590_v55 = vor.u32 %v3048_v49, %v2589_v48  ;;  %v2695_v56 = vld [vmem:[#allocation3 + $0x1b0] sm:$0xf0]  ;;  %v3105_v57 = vld [vmem:[#allocation3 + $0x2a4] sm:$0xf] }
  0x38   : > { %915 = vmatpush.bf16.msra.mxu2 %v2758_v20  ;;  %928 = vmatpush.bf16.msra.mxu3 %v2506_v24  ;;  %v2823_v58 = vld [vmem:[#allocation3 + $0x2b0] sm:$0xf0]  ;;  %v2718_v59 = vor.u32 %v3080_v51, %v2717_v50  ;;  %v2573_v60 = vld [vmem:[#allocation3 + $0xa8] sm:$0xf]  ;;  %v3044_v61 = vld [vmem:[#allocation3 + $0xb4] sm:$0xf0]  ;;  %v2698_v0 = vor.u32 %v3073_v53, %v2695_v56 }
  0x39   : > { %v2701_v62 = vld [vmem:[#allocation3 + $0x1a8] sm:$0xf]  ;;  %v3076_v63 = vld [vmem:[#allocation3 + $0x1b4] sm:$0xf0]  ;;  %v2826_v1 = vor.u32 %v3105_v57, %v2823_v58  ;;  %v284_v2 = vld [vmem:[%s282_s11] sm:$0xff]  ;;  %v2574_v4 = vor.u32 %v3044_v61, %v2573_v60  ;;  %s276_s18 = sand.u32 1, %s3467_s22  }
  0x3a   : > { %890 = vmatpush.bf16.msra.mxu0 %v2486_v31  ;;  %v285_v3 = vld [vmem:[%s282_s11 + $0x8] sm:$0xf]  ;;  %v3069_v5 = vld [vmem:[#allocation3 + $0x184] sm:$0xf]  ;;  %v2679_v6 = vld [vmem:[#allocation3 + $0x190] sm:$0xf0]  ;;  %v394_v8 = vunpack.c.l.b16 %v284_v2  ;;  %v395_v10 = vunpack.c.h.b16 %v284_v2  ;;  %v2702_v11 = vor.u32 %v3076_v63, %v2701_v62 }
  0x3b   : > { %903 = vmatpush.bf16.msra.mxu1 %v2614_v35  ;;  %v3101_v7 = vld [vmem:[#allocation3 + $0x284] sm:$0xf]  ;;  %v396_v9 = vunpack.c.l.b16 %v285_v3  ;;  %v2807_v12 = vld [vmem:[#allocation3 + $0x290] sm:$0xf0]  ;;  %v2557_v13 = vld [vmem:[#allocation3 + $0x88] sm:$0xf]  ;;  %v2682_v19 = vor.u32 %v3069_v5, %v2679_v6 }
  0x3c   : > { %916 = vmatpush.bf16.msra.mxu2 %v2742_v36  ;;  %929 = vmatpush.bf16.msra.mxu3 %v2490_v39  ;;  %v3040_v14 = vld [vmem:[#allocation3 + $0x94] sm:$0xf0]  ;;  %v2685_v15 = vld [vmem:[#allocation3 + $0x188] sm:$0xf]  ;;  %v3600_v17 = vpack.c.b16 %v394_v8, %v394_v8  ;;  %v3604_v20 = vpack.c.b16 %v395_v10, %v395_v10  ;;  %v2810_v21 = vor.u32 %v3101_v7, %v2807_v12  ;;  %v3065_v23 = vld [vmem:[#allocation3 + $0x164] sm:$0xf] }
  0x3d   : > { %v3072_v16 = vld [vmem:[#allocation3 + $0x194] sm:$0xf0]  ;;  %v3602_v18 = vpack.c.b16 %v396_v9, %v396_v9  ;;  %v2558_v22 = vor.u32 %v3040_v14, %v2557_v13  ;;  %v2663_v24 = vld [vmem:[#allocation3 + $0x170] sm:$0xf0]  ;;  %v3097_v25 = vld [vmem:[#allocation3 + $0x264] sm:$0xf] }
  0x3e   : > { %935 = vmatpush.bf16.msrb.mxu0 %v2730_v40  ;;  %v2686_v26 = vor.u32 %v3072_v16, %v2685_v15  ;;  %v2791_v27 = vld [vmem:[#allocation3 + $0x270] sm:$0xf0]  ;;  %v2541_v28 = vld [vmem:[#allocation3 + $0x68] sm:$0xf]  ;;  %v3036_v29 = vld [vmem:[#allocation3 + $0x74] sm:$0xf0]  ;;  %v2666_v32 = vor.u32 %v3065_v23, %v2663_v24  ;;  %904 = vmatmul.bf16.vlgmr.msra.gmra.mxu1 %v3604_v20 }
  0x3f   : > { %948 = vmatpush.bf16.msrb.mxu1 %v2858_v41  ;;  %891 = vmatmul.bf16.vlgmr.msra.gmra.mxu0 %v3600_v17  ;;  %v2669_v30 = vld [vmem:[#allocation3 + $0x168] sm:$0xf]  ;;  %v3068_v31 = vld [vmem:[#allocation3 + $0x174] sm:$0xf0]  ;;  %v2794_v33 = vor.u32 %v3097_v25, %v2791_v27  ;;  %v2542_v34 = vor.u32 %v3036_v29, %v2541_v28  ;;  %v3061_v35 = vld [vmem:[#allocation3 + $0x144] sm:$0xf] }
  0x40   : > { %961 = vmatpush.bf16.msrb.mxu2 %v2606_v42  ;;  %974 = vmatpush.bf16.msrb.mxu3 %v2734_v46  ;;  %v2647_v36 = vld [vmem:[#allocation3 + $0x150] sm:$0xf0]  ;;  %v3093_v37 = vld [vmem:[#allocation3 + $0x244] sm:$0xf]  ;;  %v2670_v38 = vor.u32 %v3068_v31, %v2669_v30  ;;  %v2525_v40 = vld [vmem:[#allocation3 + $0x48] sm:$0xf] }
  0x41   : > { %917 = vmatmul.bf16.vlgmr.msra.gmra.mxu2 %v3602_v18  ;;  %930 = vmatmul.bf16.vlgmr.msra.gmra.mxu3 %v3600_v17  ;;  %v2775_v39 = vld [vmem:[#allocation3 + $0x250] sm:$0xf0]  ;;  %v3032_v41 = vld [vmem:[#allocation3 + $0x54] sm:$0xf0]  ;;  %v2653_v42 = vld [vmem:[#allocation3 + $0x148] sm:$0xf]  ;;  %v2650_v44 = vor.u32 %v3061_v35, %v2647_v36 }
  0x42   : > { %936 = vmatpush.bf16.msrb.mxu0 %v2714_v52  ;;  %v3064_v43 = vld [vmem:[#allocation3 + $0x154] sm:$0xf0]  ;;  %v2778_v45 = vor.u32 %v3093_v37, %v2775_v39  ;;  %v2526_v46 = vor.u32 %v3032_v41, %v2525_v40  ;;  %v3057_v47 = vld [vmem:[#allocation3 + $0x124] sm:$0xf]  ;;  %v2631_v48 = vld [vmem:[#allocation3 + $0x130] sm:$0xf0] }
  0x43   : > { %949 = vmatpush.bf16.msrb.mxu1 %v2842_v54  ;;  %v3089_v49 = vld [vmem:[#allocation3 + $0x224] sm:$0xf]  ;;  %v2654_v50 = vor.u32 %v3064_v43, %v2653_v42  ;;  %v2759_v51 = vld [vmem:[#allocation3 + $0x230] sm:$0xf0]  ;;  %v2509_v52 = vld [vmem:[#allocation3 + $0x28] sm:$0xf]  ;;  %v2634_v56 = vor.u32 %v3057_v47, %v2631_v48 }
  0x44   : > { %962 = vmatpush.bf16.msrb.mxu2 %v2590_v55  ;;  %975 = vmatpush.bf16.msrb.mxu3 %v2718_v59  ;;  %v3028_v53 = vld [vmem:[#allocation3 + $0x34] sm:$0xf0]  ;;  %v2637_v54 = vld [vmem:[#allocation3 + $0x128] sm:$0xf]  ;;  %v3053_v57 = vld [vmem:[#allocation3 + $0x104] sm:$0xf]  ;;  %v2762_v59 = vor.u32 %v3089_v49, %v2759_v51 }
  0x45   : > { %v3060_v55 = vld [vmem:[#allocation3 + $0x134] sm:$0xf0]  ;;  %v2615_v58 = vld [vmem:[#allocation3 + $0x110] sm:$0xf0]  ;;  %v2510_v60 = vor.u32 %v3028_v53, %v2509_v52  ;;  %v3085_v61 = vld [vmem:[#allocation3 + $0x204] sm:$0xf] }
  0x46   : > { %937 = vmatpush.bf16.msrb.mxu0 %v2698_v0  ;;  %v2743_v62 = vld [vmem:[#allocation3 + $0x210] sm:$0xf0]  ;;  %v2493_v63 = vld [vmem:[#allocation3 + $0x8] sm:$0xf]  ;;  %v2638_v0 = vor.u32 %v3060_v55, %v2637_v54  ;;  %v3056_v3 = vld [vmem:[#allocation3 + $0x114] sm:$0xf0]  ;;  %v2618_v7 = vor.u32 %v3053_v57, %v2615_v58 }
  0x47   : > { %950 = vmatpush.bf16.msrb.mxu1 %v2826_v1  ;;  %v3024_v1 = vld [vmem:[#allocation3 + $0x14] sm:$0xf0]  ;;  %v2621_v2 = vld [vmem:[#allocation3 + $0x108] sm:$0xf]  ;;  %v3050_v6 = vld [vmem:[#allocation3 + $0xec] sm:$0xf] }
  0x48   : > { %963 = vmatpush.bf16.msrb.mxu2 %v2574_v4  ;;  %976 = vmatpush.bf16.msrb.mxu3 %v2702_v11  ;;  %v2861_v4 = vld [vmem:[#allocation3 + $0x2e8] sm:$0xf]  ;;  %v3116_v5 = vld [vmem:[#allocation3 + $0x2f4] sm:$0xf0]  ;;  %v2607_v8 = vld [vmem:[#allocation3 + $0xf8] sm:$0xf0]  ;;  %v2746_v11 = vor.u32 %v3085_v61, %v2743_v62  ;;  %v2494_v12 = vor.u32 %v3024_v1, %v2493_v63  ;;  %v2622_v15 = vor.u32 %v3056_v3, %v2621_v2 }
  0x49   : > { %v3082_v9 = vld [vmem:[#allocation3 + $0x1ec] sm:$0xf]  ;;  %v2735_v10 = vld [vmem:[#allocation3 + $0x1f8] sm:$0xf0]  ;;  %v2862_v16 = vor.u32 %v3116_v5, %v2861_v4  ;;  %v3112_v23 = vld [vmem:[#allocation3 + $0x2d4] sm:$0xf0] }
  0x4a   : > { %938 = vmatpush.bf16.msrb.mxu0 %v2682_v19  ;;  %v3114_v13 = vld [vmem:[#allocation3 + $0x2ec] sm:$0xf]  ;;  %v2863_v14 = vld [vmem:[#allocation3 + $0x2f8] sm:$0xf0]  ;;  %v2610_v19 = vor.u32 %v3050_v6, %v2607_v8  ;;  %v3108_v35 = vld [vmem:[#allocation3 + $0x2b4] sm:$0xf0] }
  0x4b   : > { %951 = vmatpush.bf16.msrb.mxu1 %v2810_v21  ;;  %v2738_v21 = vor.u32 %v3082_v9, %v2735_v10  ;;  %v3046_v24 = vld [vmem:[#allocation3 + $0xcc] sm:$0xf]  ;;  %v2866_v25 = vor.u32 %v3114_v13, %v2863_v14  ;;  %v2719_v28 = vld [vmem:[#allocation3 + $0x1d8] sm:$0xf0]  ;;  %v3104_v47 = vld [vmem:[#allocation3 + $0x294] sm:$0xf0] }
  0x4c   : > { %964 = vmatpush.bf16.msrb.mxu2 %v2558_v22  ;;  %977 = vmatpush.bf16.msrb.mxu3 %v2686_v26  ;;  %v2845_v22 = vld [vmem:[#allocation3 + $0x2c8] sm:$0xf]  ;;  %v2591_v26 = vld [vmem:[#allocation3 + $0xd8] sm:$0xf0]  ;;  %v3078_v27 = vld [vmem:[#allocation3 + $0x1cc] sm:$0xf] }
  0x4d   : > { %v3110_v29 = vld [vmem:[#allocation3 + $0x2cc] sm:$0xf]  ;;  %v2847_v30 = vld [vmem:[#allocation3 + $0x2d8] sm:$0xf0]  ;;  %v2846_v31 = vor.u32 %v3112_v23, %v2845_v22  ;;  %v2797_v58 = vld [vmem:[#allocation3 + $0x268] sm:$0xf] }
  0x4e   : > { %939 = vmatpush.bf16.msrb.mxu0 %v2666_v32  ;;  %v2594_v32 = vor.u32 %v3046_v24, %v2591_v26  ;;  %v3042_v36 = vld [vmem:[#allocation3 + $0xac] sm:$0xf]  ;;  %v2850_v37 = vor.u32 %v3110_v29, %v2847_v30  ;;  %v2703_v40 = vld [vmem:[#allocation3 + $0x1b8] sm:$0xf0]  ;;  %v2781_v6 = vld [vmem:[#allocation3 + $0x248] sm:$0xf] }
  0x4f   : > { %952 = vmatpush.bf16.msrb.mxu1 %v2794_v33  ;;  %v2722_v33 = vor.u32 %v3078_v27, %v2719_v28  ;;  %v3074_v39 = vld [vmem:[#allocation3 + $0x1ac] sm:$0xf]  ;;  %v2831_v42 = vld [vmem:[#allocation3 + $0x2b8] sm:$0xf0]  ;;  %v3092_v22 = vld [vmem:[#allocation3 + $0x234] sm:$0xf0] }
  0x50   : > { %965 = vmatpush.bf16.msrb.mxu2 %v2542_v34  ;;  %978 = vmatpush.bf16.msrb.mxu3 %v2670_v38  ;;  %v2829_v34 = vld [vmem:[#allocation3 + $0x2a8] sm:$0xf]  ;;  %v2575_v38 = vld [vmem:[#allocation3 + $0xb8] sm:$0xf0]  ;;  %v3106_v41 = vld [vmem:[#allocation3 + $0x2ac] sm:$0xf] }
  0x51   : > { %v2830_v43 = vor.u32 %v3108_v35, %v2829_v34  ;;  %v3038_v48 = vld [vmem:[#allocation3 + $0x8c] sm:$0xf]  ;;  %v2834_v49 = vor.u32 %v3106_v41, %v2831_v42  ;;  %v2687_v52 = vld [vmem:[#allocation3 + $0x198] sm:$0xf0]  ;;  %v2981_v42 = vld [vmem:[#allocation6 + $0xe0] sm:$0xf] }
  0x52   : > { %940 = vmatpush.bf16.msrb.mxu0 %v2650_v44  ;;  %v2578_v44 = vor.u32 %v3042_v36, %v2575_v38  ;;  %v3070_v51 = vld [vmem:[#allocation3 + $0x18c] sm:$0xf]  ;;  %v2815_v54 = vld [vmem:[#allocation3 + $0x298] sm:$0xf0]  ;;  %s277_s28 = scalar_lea.vmem [#allocation8], %s276_s18  ;;  %s2397_s9 = sshll.u32 %s2393_s26, 4  ;;  %s2398_s9 = int_to_ptr.hbm [resolvable:$true] %s2397_s9 }
  0x53   : > { %953 = vmatpush.bf16.msrb.mxu1 %v2778_v45  ;;  %v2706_v45 = vor.u32 %v3074_v39, %v2703_v40  ;;  %v3102_v53 = vld [vmem:[#allocation3 + $0x28c] sm:$0xf]  ;;  %v2690_v57 = vor.u32 %v3070_v51, %v2687_v52  ;;  %v2543_v62 = vld [vmem:[#allocation3 + $0x78] sm:$0xf0]  ;;  %s2395_s29 = sshll.u32 %s277_s28, 4  ;;  %s2385_s10 = scalar_lea.sflag [#allocation5], %s276_s18  ;;  %s2396_s29 = int_to_ptr.vmem [resolvable:$true] %s2395_s29 }
  0x54   : > { %966 = vmatpush.bf16.msrb.mxu2 %v2526_v46  ;;  %979 = vmatpush.bf16.msrb.mxu3 %v2654_v50  ;;  %v2813_v46 = vld [vmem:[#allocation3 + $0x288] sm:$0xf]  ;;  %v2559_v50 = vld [vmem:[#allocation3 + $0x98] sm:$0xf0]  ;;  %v2818_v61 = vor.u32 %v3102_v53, %v2815_v54  ;;  %v3066_v63 = vld [vmem:[#allocation3 + $0x16c] sm:$0xf] }
  0x55   : > { %v2814_v55 = vor.u32 %v3104_v47, %v2813_v46  ;;  %v3098_v1 = vld [vmem:[#allocation3 + $0x26c] sm:$0xf]  ;;  %v2799_v2 = vld [vmem:[#allocation3 + $0x278] sm:$0xf0]  ;;  %v2983_v46 = vld [vmem:[#allocation6 + $0xf0] sm:$0xf0] }
  0x56   : > { %941 = vmatpush.bf16.msrb.mxu0 %v2634_v56  ;;  %v2562_v56 = vor.u32 %v3038_v48, %v2559_v50  ;;  %v3030_v8 = vld [vmem:[#allocation3 + $0x4c] sm:$0xf]  ;;  %v2802_v9 = vor.u32 %v3098_v1, %v2799_v2  ;;  %v2527_v10 = vld [vmem:[#allocation3 + $0x58] sm:$0xf0]  ;;  %v2989_v47 = vld [vmem:[#allocation6 + $0xe8] sm:$0xf] }
  0x57   : > { %954 = vmatpush.bf16.msrb.mxu1 %v2762_v59  ;;  %v3100_v59 = vld [vmem:[#allocation3 + $0x274] sm:$0xf0]  ;;  %v3094_v13 = vld [vmem:[#allocation3 + $0x24c] sm:$0xf]  ;;  %v2783_v14 = vld [vmem:[#allocation3 + $0x258] sm:$0xf0] }
  0x58   : > { %967 = vmatpush.bf16.msrb.mxu2 %v2510_v60  ;;  %980 = vmatpush.bf16.msrb.mxu3 %v2638_v0  ;;  %v3034_v60 = vld [vmem:[#allocation3 + $0x6c] sm:$0xf]  ;;  %v2671_v0 = vld [vmem:[#allocation3 + $0x178] sm:$0xf0]  ;;  %v2798_v3 = vor.u32 %v3100_v59, %v2797_v58  ;;  %v2786_v24 = vor.u32 %v3094_v13, %v2783_v14  ;;  %v3148_v48 = vld [vmem:[#allocation6 + $0xf4] sm:$0xf0] }
  0x59   : > { %v2546_v4 = vor.u32 %v3034_v60, %v2543_v62  ;;  %v2674_v5 = vor.u32 %v3066_v63, %v2671_v0  ;;  %v3026_v23 = vld [vmem:[#allocation3 + $0x2c] sm:$0xf]  ;;  %v2639_v27 = vld [vmem:[#allocation3 + $0x138] sm:$0xf0]  ;;  %v3143_v58 = vld [vmem:[#allocation6 + $0xcc] sm:$0xf0] }
  0x5a   : > { %942 = vmatpush.bf16.msrb.mxu0 %v2618_v7  ;;  %v3096_v7 = vld [vmem:[#allocation3 + $0x254] sm:$0xf0]  ;;  %v3058_v26 = vld [vmem:[#allocation3 + $0x12c] sm:$0xf]  ;;  %v2767_v29 = vld [vmem:[#allocation3 + $0x238] sm:$0xf0] }
  0x5b   : > { %955 = vmatpush.bf16.msrb.mxu1 %v2746_v11  ;;  %v3062_v11 = vld [vmem:[#allocation3 + $0x14c] sm:$0xf]  ;;  %v2642_v34 = vor.u32 %v3058_v26, %v2639_v27  ;;  %v2495_v36 = vld [vmem:[#allocation3 + $0x18] sm:$0xf0]  ;;  %v3141_v59 = vld [vmem:[#allocation6 + $0xc4] sm:$0xf] }
  0x5c   : > { %968 = vmatpush.bf16.msrb.mxu2 %v2494_v12  ;;  %981 = vmatpush.bf16.msrb.mxu3 %v2622_v15  ;;  %v2655_v12 = vld [vmem:[#allocation3 + $0x158] sm:$0xf0]  ;;  %v2782_v15 = vor.u32 %v3096_v7, %v2781_v6  ;;  %v3090_v28 = vld [vmem:[#allocation3 + $0x22c] sm:$0xf]  ;;  %v2973_v62 = vld [vmem:[#allocation6 + $0xc8] sm:$0xf] }
  0x5d   : > { %943 = vmatmul.bf16.vlgmr.msrb.gmra.mxu0 %v3604_v20  ;;  %v3022_v35 = vld [vmem:[#allocation3 + $0xc] sm:$0xf]  ;;  %v2770_v38 = vor.u32 %v3090_v28, %v2767_v29  ;;  %v2623_v39 = vld [vmem:[#allocation3 + $0x118] sm:$0xf0]  ;;  %v3144_v63 = vld [vmem:[#allocation6 + $0xd4] sm:$0xf0] }
  0x5e   : > { %987 = vmatpush.bf16.msra.mxu0 %v2862_v16  ;;  %956 = vmatmul.bf16.vlgmr.msrb.gmra.mxu1 %v3602_v18  ;;  %v2530_v16 = vor.u32 %v3030_v8, %v2527_v10  ;;  %v3086_v40 = vld [vmem:[#allocation3 + $0x20c] sm:$0xf]  ;;  %v2751_v41 = vld [vmem:[#allocation3 + $0x218] sm:$0xf0]  ;;  %v3139_v6 = vld [vmem:[#allocation6 + $0xac] sm:$0xf0] }
  0x5f   : > { %1000 = vmatpush.bf16.msra.mxu1 %v2610_v19  ;;  %969 = vmatmul.bf16.vlgmr.msrb.gmra.mxu2 %v3600_v17  ;;  %v2658_v19 = vor.u32 %v3062_v11, %v2655_v12  ;;  %v3146_v51 = vld [vmem:[#allocation6 + $0xec] sm:$0xf]  ;;  %v2991_v52 = vld [vmem:[#allocation6 + $0xf8] sm:$0xf0]  ;;  %v2754_v53 = vor.u32 %v3086_v40, %v2751_v41  ;;  %v3137_v7 = vld [vmem:[#allocation6 + $0xa4] sm:$0xf] }
  0x60   : > { %1013 = vmatpush.bf16.msra.mxu2 %v2738_v21  ;;  %1026 = vmatpush.bf16.msra.mxu3 %v2866_v25  ;;  %v2765_v21 = vld [vmem:[#allocation3 + $0x228] sm:$0xf]  ;;  %v2511_v25 = vld [vmem:[#allocation3 + $0x38] sm:$0xf0]  ;;  %v3620_v60 = vor.u32 %v3146_v51, %v2991_v52  ;;  %v3142_v0 = vld [vmem:[#allocation6 + $0xcc] sm:$0xf] }
  0x61   : > { %982 = vmatmul.bf16.vlgmr.msrb.gmra.mxu3 %v3604_v20  ;;  %v2766_v30 = vor.u32 %v3092_v22, %v2765_v21  ;;  %v2975_v1 = vld [vmem:[#allocation6 + $0xd8] sm:$0xf0]  ;;  %v2957_v10 = vld [vmem:[#allocation6 + $0xa8] sm:$0xf]  ;;  %v3140_v11 = vld [vmem:[#allocation6 + $0xb4] sm:$0xf0] }
  0x62   : > { %988 = vmatpush.bf16.msra.mxu0 %v2846_v31  ;;  %v2749_v31 = vld [vmem:[#allocation3 + $0x208] sm:$0xf]  ;;  %v3633_v8 = vor.u32 %v3142_v0, %v2975_v1  ;;  %v3138_v12 = vld [vmem:[#allocation6 + $0xac] sm:$0xf]  ;;  %v2959_v13 = vld [vmem:[#allocation6 + $0xb8] sm:$0xf0] }
  0x63   : > { %1001 = vmatpush.bf16.msra.mxu1 %v2594_v32  ;;  %v3088_v32 = vld [vmem:[#allocation3 + $0x214] sm:$0xf0]  ;;  %v3133_v21 = vld [vmem:[#allocation6 + $0x84] sm:$0xf]  ;;  %v2935_v22 = vld [vmem:[#allocation6 + $0x90] sm:$0xf0] }
  0x64   : > { %1014 = vmatpush.bf16.msra.mxu2 %v2722_v33  ;;  %1027 = vmatpush.bf16.msra.mxu3 %v2850_v37  ;;  %v2514_v33 = vor.u32 %v3026_v23, %v2511_v25  ;;  %v3054_v37 = vld [vmem:[#allocation3 + $0x10c] sm:$0xf]  ;;  %v2941_v23 = vld [vmem:[#allocation6 + $0x88] sm:$0xf]  ;;  %v2943_v26 = vld [vmem:[#allocation6 + $0x98] sm:$0xf0]  ;;  %v3655_v28 = vor.u32 %v3133_v21, %v2935_v22 }
  0x65   : > { %v2626_v50 = vor.u32 %v3054_v37, %v2623_v39  ;;  %v3134_v25 = vld [vmem:[#allocation6 + $0x8c] sm:$0xf]  ;;  %v2927_v37 = vld [vmem:[#allocation6 + $0x78] sm:$0xf0]  ;;  %v2901_v41 = vld [vmem:[#allocation6 + $0x40] sm:$0xf] }
  0x66   : > { %989 = vmatpush.bf16.msra.mxu0 %v2830_v43  ;;  %v3147_v43 = vld [vmem:[#allocation6 + $0xec] sm:$0xf0]  ;;  %v3122_v0 = vld [vmem:[#allocation6 + $0x2c] sm:$0xf]  ;;  %v2895_v1 = vld [vmem:[#allocation6 + $0x38] sm:$0xf0] }
  0x67   : > { %1002 = vmatpush.bf16.msra.mxu1 %v2578_v44  ;;  %v3145_v44 = vld [vmem:[#allocation6 + $0xe4] sm:$0xf]  ;;  %v3614_v54 = vor.u32 %v3147_v43, %v2981_v42  ;;  %v3127_v42 = vld [vmem:[#allocation6 + $0x4c] sm:$0xf0]  ;;  %v3118_v21 = vld [vmem:[#allocation6 + $0xc] sm:$0xf] }
  0x68   : > { %1015 = vmatpush.bf16.msra.mxu2 %v2706_v45  ;;  %1028 = vmatpush.bf16.msra.mxu3 %v2834_v49  ;;  %v2750_v45 = vor.u32 %v3088_v32, %v2749_v31  ;;  %v2498_v49 = vor.u32 %v3022_v35, %v2495_v36  ;;  %v3129_v31 = vld [vmem:[#allocation6 + $0x64] sm:$0xf]  ;;  %v3660_v32 = vor.u32 %v3134_v25, %v2943_v26  ;;  %v3132_v35 = vld [vmem:[#allocation6 + $0x74] sm:$0xf0]  ;;  %v3130_v36 = vld [vmem:[#allocation6 + $0x6c] sm:$0xf] }
  0x69   : > { %v3125_v43 = vld [vmem:[#allocation6 + $0x44] sm:$0xf]  ;;  %v2879_v22 = vld [vmem:[#allocation6 + $0x18] sm:$0xf0]  ;;  %s3419_s11 = sshra.s32 %s2398_s9, 4  ;;  %s3425_s14 = scalar_lea.hbm %s4085_s6, 2  ;;  %s3420_s11 = int_to_ptr.hbm [resolvable:$true] %s3419_s11 }
  0x6a   : > { %990 = vmatpush.bf16.msra.mxu0 %v2814_v55  ;;  %v3616_v55 = vor.u32 %v3145_v44, %v2983_v46  ;;  %v3672_v44 = vor.u32 %v3130_v36, %v2927_v37  ;;  %v2909_v46 = vld [vmem:[#allocation6 + $0x48] sm:$0xf]  ;;  %v3708_v26 = vor.u32 %v3118_v21, %v2879_v22  ;;  %s3421_s12 = scalar_lea.hbm %s3420_s11, 1  ;;  %p3426_p3 = scmp.lt.s32.totalorder %s3420_s11, %s4085_s6 }
  0x6b   : > { %1003 = vmatpush.bf16.msra.mxu1 %v2562_v56  ;;  %v3618_v56 = vor.u32 %v3148_v48, %v2989_v47  ;;  %v3128_v47 = vld [vmem:[#allocation6 + $0x54] sm:$0xf0]  ;;  %v3126_v48 = vld [vmem:[#allocation6 + $0x4c] sm:$0xf]  ;;  %p3422_p0 = scmp.ne.s32.totalorder %s3420_s11, %s3421_s12  ;;  %p3427_p4 = scmp.lt.s32.totalorder %s3425_s14, %s3421_s12 }
  0x6c   : > { %1016 = vmatpush.bf16.msra.mxu2 %v2690_v57  ;;  %1029 = vmatpush.bf16.msra.mxu3 %v2818_v61  ;;  %v2965_v57 = vld [vmem:[#allocation6 + $0xc0] sm:$0xf]  ;;  %v2967_v61 = vld [vmem:[#allocation6 + $0xd0] sm:$0xf0]  ;;  %v3681_v52 = vor.u32 %v3128_v47, %v2909_v46 }
  0x6d   : > { %v3623_v2 = vor.u32 %v3143_v58, %v2965_v57  ;;  %v3123_v57 = vld [vmem:[#allocation6 + $0x2c] sm:$0xf0]  ;;  %v3121_v58 = vld [vmem:[#allocation6 + $0x24] sm:$0xf]  ;;  %p3423_p1 = pnand %p3422_p0, %p3555_p5  ;;  %p3428_p7 = por %p3427_p4, %p3426_p3 }
  0x6e   : > { %991 = vmatpush.bf16.msra.mxu0 %v2798_v3  ;;  %v3627_v3 = vor.u32 %v3141_v59, %v2967_v61  ;;  %v2887_v61 = vld [vmem:[#allocation6 + $0x30] sm:$0xf0] }
  0x6f   : > { %1004 = vmatpush.bf16.msra.mxu1 %v2546_v4  ;;  %v3629_v4 = vor.u32 %v3144_v63, %v2973_v62  ;;  %v2893_v62 = vld [vmem:[#allocation6 + $0x28] sm:$0xf]  ;;  %v3124_v63 = vld [vmem:[#allocation6 + $0x34] sm:$0xf0]  ;;  %p3424_p2 = pneg %p3423_p1 }
  0x70   : > { %1017 = vmatpush.bf16.msra.mxu2 %v2674_v5  ;;  %1030 = vmatpush.bf16.msra.mxu3 %v2802_v9  ;;  %v2949_v5 = vld [vmem:[#allocation6 + $0xa0] sm:$0xf]  ;;  %v2951_v9 = vld [vmem:[#allocation6 + $0xb0] sm:$0xf0] }
  0x71   : > { %v3638_v14 = vor.u32 %v3139_v6, %v2949_v5  ;;  %v3691_v6 = vor.u32 %v3121_v58, %v2887_v61  ;;  %p3429_p8 = pnand %p3428_p7, %p3424_p2 }
  0x72   : > { %992 = vmatpush.bf16.msra.mxu0 %v2782_v15  ;;  %v3644_v15 = vor.u32 %v3140_v11, %v2957_v10  ;;  %v3119_v10 = vld [vmem:[#allocation6 + $0xc] sm:$0xf0]  ;;  %v3117_v11 = vld [vmem:[#allocation6 + $0x4] sm:$0xf] }
  0x73   : > { %1005 = vmatpush.bf16.msra.mxu1 %v2530_v16  ;;  %v2933_v16 = vld [vmem:[#allocation6 + $0x80] sm:$0xf] }
  0x74   : > { %1018 = vmatpush.bf16.msra.mxu2 %v2658_v19  ;;  %1031 = vmatpush.bf16.msra.mxu3 %v2786_v24  ;;  %v3135_v19 = vld [vmem:[#allocation6 + $0x8c] sm:$0xf0]  ;;  %v3136_v24 = vld [vmem:[#allocation6 + $0x94] sm:$0xf0] }
  0x75   : > { %v3651_v27 = vor.u32 %v3135_v19, %v2933_v16  ;;  %v3657_v29 = vor.u32 %v3136_v24, %v2941_v23  ;;  %v2877_v16 = vld [vmem:[#allocation6 + $0x8] sm:$0xf]  ;;  %v3120_v19 = vld [vmem:[#allocation6 + $0x14] sm:$0xf0] }
  0x76   : > { %993 = vmatpush.bf16.msra.mxu0 %v2766_v30  ;;  %v3131_v30 = vld [vmem:[#allocation6 + $0x6c] sm:$0xf0]  ;;  %v3705_v25 = vor.u32 %v3120_v19, %v2877_v16 }
  0x77   : > { %1006 = vmatpush.bf16.msra.mxu1 %v2514_v33  ;;  %v2919_v33 = vld [vmem:[#allocation6 + $0x70] sm:$0xf0] }
  0x78   : > { %1019 = vmatpush.bf16.msra.mxu2 %v2642_v34  ;;  %1032 = vmatpush.bf16.msra.mxu3 %v2770_v38  ;;  %v2925_v34 = vld [vmem:[#allocation6 + $0x68] sm:$0xf]  ;;  %v3667_v39 = vor.u32 %v3129_v31, %v2919_v33 }
  0x79   : > { %v3669_v40 = vor.u32 %v3132_v35, %v2925_v34 }
  0x7a   : > { %994 = vmatpush.bf16.msra.mxu0 %v2750_v45  ;;  %v2903_v45 = vld [vmem:[#allocation6 + $0x50] sm:$0xf0] }
  0x7b   : > { %1007 = vmatpush.bf16.msra.mxu1 %v2498_v49  ;;  %v2911_v49 = vld [vmem:[#allocation6 + $0x58] sm:$0xf0]  ;;  %v3679_v51 = vor.u32 %v3125_v43, %v2903_v45 }
  0x7c   : > { %1020 = vmatpush.bf16.msra.mxu2 %v2626_v50  ;;  %1033 = vmatpush.bf16.msra.mxu3 %v2754_v53  ;;  %v3675_v50 = vor.u32 %v3127_v42, %v2901_v41  ;;  %v2885_v53 = vld [vmem:[#allocation6 + $0x20] sm:$0xf]  ;;  %v3684_v59 = vor.u32 %v3126_v48, %v2911_v49 }
  0x7d   : > { %995 = vmatmul.bf16.vlgmr.msra.gmra.mxu0 %v3602_v18  ;;  %v3687_v5 = vor.u32 %v3123_v57, %v2885_v53 }
  0x7e   : > { %1236 = vmatpush.bf16.msrb.mxu0 %v3614_v54  ;;  %1008 = vmatmul.bf16.vlgmr.msra.gmra.mxu1 %v3600_v17  ;;  %v3648_v17 = vor.u32 %v3138_v12, %v2959_v13  ;;  %v3696_v12 = vor.u32 %v3122_v0, %v2895_v1  ;;  %v2871_v13 = vld [vmem:[#allocation6 + $0x10] sm:$0xf0] }
  0x7f   : > { %1249 = vmatpush.bf16.msrb.mxu1 %v3616_v55  ;;  %1021 = vmatmul.bf16.vlgmr.msra.gmra.mxu2 %v3604_v20  ;;  %v3642_v20 = vor.u32 %v3137_v7, %v2951_v9  ;;  %v3693_v7 = vor.u32 %v3124_v63, %v2893_v62  ;;  %v2869_v9 = vld [vmem:[#allocation6] sm:$0xf]  ;;  %v3703_v24 = vor.u32 %v3117_v11, %v2871_v13 }
  0x80   : > { %1262 = vmatpush.bf16.msrb.mxu2 %v3618_v56  ;;  %1275 = vmatpush.bf16.msrb.mxu3 %v3620_v60  ;;  %v3699_v23 = vor.u32 %v3119_v10, %v2869_v9 }
  0x81   : > { %1034 = vmatmul.bf16.vlgmr.msra.gmra.mxu3 %v3602_v18  ;;  %v2917_v18 = vld [vmem:[#allocation6 + $0x60] sm:$0xf] }
  0x82   : > { %1237 = vmatpush.bf16.msrb.mxu0 %v3623_v2  ;;  %v3663_v38 = vor.u32 %v3131_v30, %v2917_v18  ;;  %v3481_v18 = vmov 0   ;;  %v382_v30 = vld [vmem:[%s4082_s3] sm:$0xf] }
  0x83   : > { %1250 = vmatpush.bf16.msrb.mxu1 %v3627_v3  ;;  %v384_v31 = vperm.slane %v382_v30, 0  ;;  %v385_v46 = vperm.slane %v382_v30, 1  ;;  %v386_v11 = vperm.slane %v382_v30, 2  ;;  %v387_v16 = vperm.slane %v382_v30, 3 }
  0x84   : > { %1263 = vmatpush.bf16.msrb.mxu2 %v3629_v4  ;;  %1276 = vmatpush.bf16.msrb.mxu3 %v3633_v8 }
  0x86   : > { %1238 = vmatpush.bf16.msrb.mxu0 %v3638_v14 }
  0x87   : > { %1251 = vmatpush.bf16.msrb.mxu1 %v3642_v20 }
  0x88   : > { %1264 = vmatpush.bf16.msrb.mxu2 %v3644_v15  ;;  %1277 = vmatpush.bf16.msrb.mxu3 %v3648_v17 }
  0x8a   : > { %1239 = vmatpush.bf16.msrb.mxu0 %v3651_v27 }
  0x8b   : > { %1252 = vmatpush.bf16.msrb.mxu1 %v3655_v28 }
  0x8c   : > { %1265 = vmatpush.bf16.msrb.mxu2 %v3657_v29  ;;  %1278 = vmatpush.bf16.msrb.mxu3 %v3660_v32 }
  0x8e   : > { %1240 = vmatpush.bf16.msrb.mxu0 %v3663_v38 }
  0x8f   : > { %1253 = vmatpush.bf16.msrb.mxu1 %v3667_v39 }
  0x90   : > { %1266 = vmatpush.bf16.msrb.mxu2 %v3669_v40  ;;  %1279 = vmatpush.bf16.msrb.mxu3 %v3672_v44 }
  0x92   : > { %1241 = vmatpush.bf16.msrb.mxu0 %v3675_v50 }
  0x93   : > { %1254 = vmatpush.bf16.msrb.mxu1 %v3679_v51 }
  0x94   : > { %1267 = vmatpush.bf16.msrb.mxu2 %v3681_v52  ;;  %1280 = vmatpush.bf16.msrb.mxu3 %v3684_v59 }
  0x96   : > { %1242 = vmatpush.bf16.msrb.mxu0 %v3687_v5 }
  0x97   : > { %1255 = vmatpush.bf16.msrb.mxu1 %v3691_v6 }
  0x98   : > { %1268 = vmatpush.bf16.msrb.mxu2 %v3693_v7  ;;  %1281 = vmatpush.bf16.msrb.mxu3 %v3696_v12 }
  0x9a   : > { %1243 = vmatpush.bf16.msrb.mxu0 %v3699_v23 }
  0x9b   : > { %1256 = vmatpush.bf16.msrb.mxu1 %v3703_v24 }
  0x9c   : > { %1269 = vmatpush.bf16.msrb.mxu2 %v3705_v25  ;;  %1282 = vmatpush.bf16.msrb.mxu3 %v3708_v26 }
  0x9d   : > { %1244 = vmatmul.bf16.vlgmr.msrb.gmra.mxu0 %v3481_v18 }
  0x9e   : > { %1376 = vmatpush.bf16.msra.mxu0 %v3614_v54  ;;  %1257 = vmatmul.bf16.vlgmr.msrb.gmra.mxu1 %v3481_v18 }
  0x9f   : > { %1389 = vmatpush.bf16.msra.mxu1 %v3616_v55  ;;  %1270 = vmatmul.bf16.vlgmr.msrb.gmra.mxu2 %v3481_v18 }
  0xa0   : > { %1283 = vmatmul.bf16.vlgmr.msrb.gmra.mxu3 %v3481_v18  ;;  %1402 = vmatpush.bf16.msra.mxu2 %v3618_v56 }
  0xa1   : > { %1415 = vmatpush.bf16.msra.mxu3 %v3620_v60 }
  0xa2   : > { %1377 = vmatpush.bf16.msra.mxu0 %v3623_v2 }
  0xa3   : > { %1390 = vmatpush.bf16.msra.mxu1 %v3627_v3 }
  0xa4   : > { %1403 = vmatpush.bf16.msra.mxu2 %v3629_v4 }
  0xa5   : > { %1416 = vmatpush.bf16.msra.mxu3 %v3633_v8 }
  0xa6   : > { %1378 = vmatpush.bf16.msra.mxu0 %v3638_v14 }
  0xa7   : > { %1391 = vmatpush.bf16.msra.mxu1 %v3642_v20 }
  0xa8   : > { %1404 = vmatpush.bf16.msra.mxu2 %v3644_v15 }
  0xa9   : > { %1417 = vmatpush.bf16.msra.mxu3 %v3648_v17 }
  0xaa   : > { %1379 = vmatpush.bf16.msra.mxu0 %v3651_v27 }
  0xab   : > { %1392 = vmatpush.bf16.msra.mxu1 %v3655_v28 }
  0xac   : > { %1405 = vmatpush.bf16.msra.mxu2 %v3657_v29 }
  0xad   : > { %1418 = vmatpush.bf16.msra.mxu3 %v3660_v32 }
  0xae   : > { %1380 = vmatpush.bf16.msra.mxu0 %v3663_v38 }
  0xaf   : > { %1393 = vmatpush.bf16.msra.mxu1 %v3667_v39 }
  0xb0   : > { %1406 = vmatpush.bf16.msra.mxu2 %v3669_v40 }
  0xb1   : > { %1419 = vmatpush.bf16.msra.mxu3 %v3672_v44 }
  0xb2   : > { %1381 = vmatpush.bf16.msra.mxu0 %v3675_v50 }
  0xb3   : > { %1394 = vmatpush.bf16.msra.mxu1 %v3679_v51 }
  0xb4   : > { %1407 = vmatpush.bf16.msra.mxu2 %v3681_v52 }
  0xb5   : > { %1420 = vmatpush.bf16.msra.mxu3 %v3684_v59 }
  0xb6   : > { %1382 = vmatpush.bf16.msra.mxu0 %v3687_v5 }
  0xb7   : > { %1395 = vmatpush.bf16.msra.mxu1 %v3691_v6 }
  0xb8   : > { %1408 = vmatpush.bf16.msra.mxu2 %v3693_v7 }
  0xb9   : > { %1421 = vmatpush.bf16.msra.mxu3 %v3696_v12 }
  0xba   : > { %1383 = vmatpush.bf16.msra.mxu0 %v3699_v23 }
  0xbb   : > { %1396 = vmatpush.bf16.msra.mxu1 %v3703_v24  ;;  %v905_v35 = vpop.f32.mrf.mxu1 }
  0xbc   : > { %1409 = vmatpush.bf16.msra.mxu2 %v3705_v25  ;;  %v892_v33 = vpop.f32.mrf.mxu0 }
  0xbd   : > { %1422 = vmatpush.bf16.msra.mxu3 %v3708_v26  ;;  %v893_v34 = vadd.f32 %v892_v33, %v384_v31 }
  0xbe   : > { %1513 = vmatpush.bf16.msrb.mxu0 %v3614_v54 }
  0xbf   : > { %1526 = vmatpush.bf16.msrb.mxu1 %v3616_v55  ;;  %v906_v36 = vadd.f32 %v905_v35, %v893_v34 }
  0xc0   : > { %1539 = vmatpush.bf16.msrb.mxu2 %v3618_v56 }
  0xc1   : > { %1552 = vmatpush.bf16.msrb.mxu3 %v3620_v60 }
  0xc2   : > { %1514 = vmatpush.bf16.msrb.mxu0 %v3623_v2 }
  0xc3   : > { %1527 = vmatpush.bf16.msrb.mxu1 %v3627_v3  ;;  %v907_v45 = vpop.f32.mrf.mxu1 }
  0xc4   : > { %1540 = vmatpush.bf16.msrb.mxu2 %v3629_v4  ;;  %v918_v37 = vpop.f32.mrf.mxu2  ;;  %v931_v41 = vpop.f32.mrf.mxu3 }
  0xc5   : > { %1553 = vmatpush.bf16.msrb.mxu3 %v3633_v8  ;;  %v919_v42 = vadd.f32 %v918_v37, %v906_v36  ;;  %v894_v43 = vpop.f32.mrf.mxu0  ;;  %v932_v49 = vadd.f32 %v931_v41, %v385_v46 }
  0xc6   : > { %1515 = vmatpush.bf16.msrb.mxu0 %v3638_v14 }
  0xc7   : > { %1528 = vmatpush.bf16.msrb.mxu1 %v3642_v20  ;;  %1039 = vst [vmem:[#allocation2] sm:$0xff] %v919_v42 }
  0xc8   : > { %1541 = vmatpush.bf16.msrb.mxu2 %v3644_v15 }
  0xc9   : > { %1554 = vmatpush.bf16.msrb.mxu3 %v3648_v17 }
  0xca   : > { %1516 = vmatpush.bf16.msrb.mxu0 %v3651_v27 }
  0xcb   : > { %1529 = vmatpush.bf16.msrb.mxu1 %v3655_v28 }
  0xcc   : > { %1542 = vmatpush.bf16.msrb.mxu2 %v3657_v29  ;;  %v920_v47 = vpop.f32.mrf.mxu2  ;;  %v933_v48 = vpop.f32.mrf.mxu3 }
  0xcd   : > { %1555 = vmatpush.bf16.msrb.mxu3 %v3660_v32 }
  0xce   : > { %1517 = vmatpush.bf16.msrb.mxu0 %v3663_v38 }
  0xcf   : > { %1530 = vmatpush.bf16.msrb.mxu1 %v3667_v39 }
  0xd0   : > { %1543 = vmatpush.bf16.msrb.mxu2 %v3669_v40 }
  0xd1   : > { %1556 = vmatpush.bf16.msrb.mxu3 %v3672_v44 }
  0xd2   : > { %1518 = vmatpush.bf16.msrb.mxu0 %v3675_v50 }
  0xd3   : > { %1531 = vmatpush.bf16.msrb.mxu1 %v3679_v51 }
  0xd4   : > { %1544 = vmatpush.bf16.msrb.mxu2 %v3681_v52 }
  0xd5   : > { %1557 = vmatpush.bf16.msrb.mxu3 %v3684_v59 }
  0xd6   : > { %1519 = vmatpush.bf16.msrb.mxu0 %v3687_v5 }
  0xd7   : > { %1532 = vmatpush.bf16.msrb.mxu1 %v3691_v6 }
  0xd8   : > { %1545 = vmatpush.bf16.msrb.mxu2 %v3693_v7 }
  0xd9   : > { %1558 = vmatpush.bf16.msrb.mxu3 %v3696_v12 }
  0xda   : > { %1520 = vmatpush.bf16.msrb.mxu0 %v3699_v23  ;;  %v944_v53 = vpop.f32.mrf.mxu0 }
  0xdb   : > { %1533 = vmatpush.bf16.msrb.mxu1 %v3703_v24  ;;  %v945_v57 = vadd.f32 %v944_v53, %v932_v49  ;;  %v957_v58 = vpop.f32.mrf.mxu1 }
  0xdc   : > { %1546 = vmatpush.bf16.msrb.mxu2 %v3705_v25 }
  0xdd   : > { %1559 = vmatpush.bf16.msrb.mxu3 %v3708_v26  ;;  %v958_v61 = vadd.f32 %v957_v58, %v945_v57 }
  0xdf   : > { %1040 = vst [vmem:[#allocation2 + $0x8] sm:$0xff] %v958_v61 }
  0xe2   : > { %v970_v62 = vpop.f32.mrf.mxu2  ;;  %v946_v0 = vpop.f32.mrf.mxu0 }
  0xe3   : > { %v959_v1 = vpop.f32.mrf.mxu1  ;;  %v971_v13 = vadd.f32 %v970_v62, %v386_v11 }
  0xe4   : > { %v983_v63 = vpop.f32.mrf.mxu3 }
  0xe5   : > { %v984_v19 = vadd.f32 %v983_v63, %v971_v13 }
  0xea   : > { %v972_v9 = vpop.f32.mrf.mxu2 }
  0xec   : > { %v985_v10 = vpop.f32.mrf.mxu3 }
  0xfa   : > { %v996_v18 = vpop.f32.mrf.mxu0 }
  0xfb   : > { %v1009_v21 = vpop.f32.mrf.mxu1  ;;  %v997_v31 = vadd.f32 %v996_v18, %v984_v19 }
  0xfc   : > { %v1010_v22 = vadd.f32 %v1009_v21, %v387_v16 }
  0xfd   : > { %1041 = vst [vmem:[#allocation2 + $0x10] sm:$0xff] %v997_v31 }
 0x102   : > { %v1022_v33 = vpop.f32.mrf.mxu2  ;;  %v998_v41 = vpop.f32.mrf.mxu0 }
 0x103   : > { %v1023_v34 = vadd.f32 %v1022_v33, %v1010_v22  ;;  %v1011_v37 = vpop.f32.mrf.mxu1 }
 0x104   : > { %v1035_v35 = vpop.f32.mrf.mxu3 }
 0x105   : > { %v1036_v36 = vadd.f32 %v1035_v35, %v1023_v34 }
 0x107   : > { %1042 = vst [vmem:[#allocation2 + $0x18] sm:$0xff] %v1036_v36 }
 0x10a   : > { %v1024_v42 = vpop.f32.mrf.mxu2 }
 0x10c   : > { %v1037_v43 = vpop.f32.mrf.mxu3 }
 0x10e   : > { %v1043_v63 = vld [vmem:[#allocation2] ss:$8 sm:$0xf] }
 0x11a   : > { %v1245_v45 = vpop.f32.mrf.mxu0 }
 0x11b   : > { %v1258_v46 = vpop.f32.mrf.mxu1 }
 0x11c   : > { %v1292_v47 = vrot.slane %v1258_v46, 7 }
 0x11e   : > { %v1296_v57 = vsel %vm1295_vm0, %v1245_v45, %v1292_v47 }
 0x122   : > { %v1271_v30 = vpop.f32.mrf.mxu2  ;;  %v1247_v53 = vpop.f32.mrf.mxu0 }
 0x123   : > { %v1293_v48 = vrot.slane %v1271_v30, 6  ;;  %v1284_v49 = vpop.f32.mrf.mxu3  ;;  %v1260_v61 = vpop.f32.mrf.mxu1 }
 0x124   : > { %v1294_v58 = vrot.slane %v1284_v49, 5 }
 0x126   : > { %v1298_v62 = vsel %vm1297_vm1, %v1293_v48, %v1294_v58 }
 0x127   : > { %v1300_v0 = vsel %vm1299_vm2, %v1296_v57, %v1298_v62 }
 0x128   : > { %v1302_v1 = vadd.f32 %v1300_v0, %v1043_v63 }
 0x12a   : > { %v2995_v9 = vmul.f32 -1.442695, %v1302_v1  ;;  %v1323_v10 = vrot.slane %v1302_v1, 1  ;;  %v1347_v11 = vrot.slane %v1302_v1, 3  ;;  %v1273_v13 = vpop.f32.mrf.mxu2  ;;  %v1344_v42 = vrot.slane %v1302_v1, 2 }
 0x12b   : > { %v1286_v16 = vpop.f32.mrf.mxu3 }
 0x12c   : > { %3213 = vpow2.f32 %v2995_v9  ;;  %v2996_v19 = vmul.f32 -1.442695, %v1323_v10  ;;  %v2997_v21 = vmul.f32 -1.442695, %v1347_v11 }
 0x12e   : > { %3215 = vpow2.f32 %v2996_v19 }
 0x12f   : > { %3217 = vpow2.f32 %v2997_v21 }
 0x132   : > { %v3214_v22 = vpop.eup %3213 }
 0x133   : > { %v1306_v18 = vadd.f32 1.0, %v3214_v22 }
 0x134   : > { %v3216_v31 = vpop.eup %3215 }
 0x135   : > { %v3218_v33 = vpop.eup %3217  ;;  %3219 = vrcp.f32 %v1306_v18  ;;  %v1328_v34 = vadd.f32 1.0, %v3216_v31  ;;  %v1318_v47 = vand.u32 2147483648, %v1306_v18  ;;  %v1316_v49 = vand.u32 2147483647, %v1306_v18 }
 0x136   : > { %v1352_v35 = vadd.f32 1.0, %v3218_v33  ;;  %vm1312_vm4 = vweird.f32 %v1306_v18 }
 0x137   : > { %3221 = vrcp.f32 %v1328_v34  ;;  %v1340_v57 = vand.u32 2147483648, %v1328_v34  ;;  %v1338_v62 = vand.u32 2147483647, %v1328_v34  ;;  %v1319_v63 = vor.u32 1.1754944e-38, %v1318_v47 }
 0x138   : > { %3223 = vrcp.f32 %v1352_v35  ;;  %vm1317_vm7 = vcmp.eq.f32.partialorder %v1316_v49, 8.507059e+37  ;;  %vm1334_vm8 = vweird.f32 %v1328_v34  ;;  %vm1358_vm12 = vweird.f32 %v1352_v35 }
 0x139   : > { %3225 = vtanh.f32 %v1344_v42  ;;  %v1341_v11 = vor.u32 1.1754944e-38, %v1340_v57  ;;  %vm1339_vm10 = vcmp.eq.f32.partialorder %v1338_v62, 8.507059e+37 }
 0x13b   : > { %v3220_v36 = vpop.eup %3219 }
 0x13c   : > { %v1308_v37 = vmul.f32 %v3220_v36, %v1306_v18  ;;  %vm1313_vm3 = vweird.f32 %v3220_v36 }
 0x13d   : > { %v3222_v41 = vpop.eup %3221  ;;  %vm1314_vm6 = vmor %vm1312_vm4, %vm1313_vm3 }
 0x13e   : > { %v3224_v43 = vpop.eup %3223  ;;  %v1309_v45 = vsub.f32 1.0, %v1308_v37  ;;  %v1330_v46 = vmul.f32 %v3222_v41, %v1328_v34  ;;  %vm1335_vm5 = vweird.f32 %v3222_v41  ;;  %v1364_v37 = vand.u32 2147483648, %v1352_v35 }
 0x13f   : > { %v1354_v30 = vmul.f32 %v3224_v43, %v1352_v35  ;;  %vm1336_vm9 = vmor %vm1334_vm8, %vm1335_vm5  ;;  %v3226_v16 = vpop.eup %3225  ;;  %vm1359_vm11 = vweird.f32 %v3224_v43 }
 0x140   : > { %v1310_v48 = vmul.f32 %v3220_v36, %v1309_v45  ;;  %v1331_v53 = vsub.f32 1.0, %v1330_v46  ;;  %vm1360_vm13 = vmor %vm1358_vm12, %vm1359_vm11  ;;  %v1365_v42 = vor.u32 1.1754944e-38, %v1364_v37 }
 0x141   : > { %v1355_v0 = vsub.f32 1.0, %v1354_v30 }
 0x142   : > { %v1311_v58 = vadd.f32 %v3220_v36, %v1310_v48  ;;  %v1332_v61 = vmul.f32 %v3222_v41, %v1331_v53 }
 0x143   : > { %v1356_v21 = vmul.f32 %v3224_v43, %v1355_v0  ;;  %v1374_v0 = vld [vmem:[#allocation2 + $0x1] ss:$8 sm:$0xf] }
 0x144   : > { %v1315_v1 = vsel %vm1314_vm6, %v3220_v36, %v1311_v58  ;;  %v1333_v9 = vadd.f32 %v3222_v41, %v1332_v61  ;;  %v1362_v36 = vand.u32 2147483647, %v1352_v35 }
 0x145   : > { %v1320_v10 = vsel %vm1317_vm7, %v1319_v63, %v1315_v1  ;;  %v1357_v33 = vadd.f32 %v3224_v43, %v1356_v21 }
 0x146   : > { %v1337_v13 = vsel %vm1336_vm9, %v3222_v41, %v1333_v9  ;;  %v1369_v18 = vmul.f32 %v3226_v16, %v1320_v10  ;;  %vm1363_vm14 = vcmp.eq.f32.partialorder %v1362_v36, 8.507059e+37 }
 0x147   : > { %v1342_v19 = vsel %vm1339_vm10, %v1341_v11, %v1337_v13  ;;  %v1361_v34 = vsel %vm1360_vm13, %v3224_v43, %v1357_v33 }
 0x148   : > { %v1368_v22 = vmul.f32 0.0, %v1342_v19  ;;  %v1366_v45 = vsel %vm1363_vm14, %v1365_v42, %v1361_v34 }
 0x14a   : > { %v3784_v31 = vadd.f32 %v1369_v18, %v1368_v22 }
 0x14c   : > { %3227 = vtanh.f32 %v3784_v31 }
 0x152   : > { %v3228_v41 = vpop.eup %3227 }
 0x153   : > { %v1372_v46 = vmul.f32 %v3228_v41, %v1366_v45 }
 0x155   : > { %v1375_v47 = vpack.c.bf16 %v1372_v46, %v1372_v46 }
 0x157   : > { %1384 = vmatmul.bf16.vlgmr.msra.gmra.mxu0 %v1375_v47  ;;  %1397 = vmatmul.bf16.vlgmr.msra.gmra.mxu1 %v1375_v47 }
 0x158   : > { %1410 = vmatmul.bf16.vlgmr.msra.gmra.mxu2 %v1375_v47  ;;  %1423 = vmatmul.bf16.vlgmr.msra.gmra.mxu3 %v1375_v47 }
 0x159   : > { %1650 = vmatpush.bf16.msra.mxu0 %v3614_v54  ;;  %1663 = vmatpush.bf16.msra.mxu1 %v3616_v55 }
 0x15a   : > { %1676 = vmatpush.bf16.msra.mxu2 %v3618_v56  ;;  %1689 = vmatpush.bf16.msra.mxu3 %v3620_v60 }
 0x15d   : > { %1651 = vmatpush.bf16.msra.mxu0 %v3623_v2  ;;  %1664 = vmatpush.bf16.msra.mxu1 %v3627_v3 }
 0x15e   : > { %1677 = vmatpush.bf16.msra.mxu2 %v3629_v4  ;;  %1690 = vmatpush.bf16.msra.mxu3 %v3633_v8 }
 0x161   : > { %1652 = vmatpush.bf16.msra.mxu0 %v3638_v14  ;;  %1665 = vmatpush.bf16.msra.mxu1 %v3642_v20 }
 0x162   : > { %1678 = vmatpush.bf16.msra.mxu2 %v3644_v15  ;;  %1691 = vmatpush.bf16.msra.mxu3 %v3648_v17 }
 0x165   : > { %1653 = vmatpush.bf16.msra.mxu0 %v3651_v27  ;;  %1666 = vmatpush.bf16.msra.mxu1 %v3655_v28 }
 0x166   : > { %1679 = vmatpush.bf16.msra.mxu2 %v3657_v29  ;;  %1692 = vmatpush.bf16.msra.mxu3 %v3660_v32 }
 0x169   : > { %1654 = vmatpush.bf16.msra.mxu0 %v3663_v38  ;;  %1667 = vmatpush.bf16.msra.mxu1 %v3667_v39 }
 0x16a   : > { %1680 = vmatpush.bf16.msra.mxu2 %v3669_v40  ;;  %1693 = vmatpush.bf16.msra.mxu3 %v3672_v44 }
 0x16d   : > { %1655 = vmatpush.bf16.msra.mxu0 %v3675_v50  ;;  %1668 = vmatpush.bf16.msra.mxu1 %v3679_v51 }
 0x16e   : > { %1681 = vmatpush.bf16.msra.mxu2 %v3681_v52  ;;  %1694 = vmatpush.bf16.msra.mxu3 %v3684_v59 }
 0x171   : > { %1656 = vmatpush.bf16.msra.mxu0 %v3687_v5  ;;  %1669 = vmatpush.bf16.msra.mxu1 %v3691_v6 }
 0x172   : > { %1682 = vmatpush.bf16.msra.mxu2 %v3693_v7  ;;  %1695 = vmatpush.bf16.msra.mxu3 %v3696_v12 }
 0x175   : > { %1657 = vmatpush.bf16.msra.mxu0 %v3699_v23  ;;  %1670 = vmatpush.bf16.msra.mxu1 %v3703_v24 }
 0x176   : > { %1683 = vmatpush.bf16.msra.mxu2 %v3705_v25  ;;  %1696 = vmatpush.bf16.msra.mxu3 %v3708_v26 }
 0x1d4   : > { %v1385_v35 = vpop.f32.mrf.mxu0  ;;  %v1398_v43 = vpop.f32.mrf.mxu1 }
 0x1d5   : > { %v1432_v30 = vrot.slane %v1398_v43, 7 }
 0x1d7   : > { %v1435_v62 = vsel %vm1295_vm0, %v1385_v35, %v1432_v30 }
 0x1db   : > { %v1411_v48 = vpop.f32.mrf.mxu2  ;;  %v1424_v49 = vpop.f32.mrf.mxu3 }
 0x1dc   : > { %v1433_v53 = vrot.slane %v1411_v48, 6  ;;  %v1434_v57 = vrot.slane %v1424_v49, 5  ;;  %v1387_v58 = vpop.f32.mrf.mxu0  ;;  %v1400_v61 = vpop.f32.mrf.mxu1 }
 0x1de   : > { %v1436_v63 = vsel %vm1297_vm1, %v1433_v53, %v1434_v57 }
 0x1df   : > { %v1437_v1 = vsel %vm1299_vm2, %v1435_v62, %v1436_v63 }
 0x1e0   : > { %v1439_v9 = vadd.f32 %v1437_v1, %v1374_v0 }
 0x1e2   : > { %v2998_v10 = vmul.f32 -1.442695, %v1439_v9  ;;  %v1460_v11 = vrot.slane %v1439_v9, 1  ;;  %v1484_v13 = vrot.slane %v1439_v9, 3  ;;  %v1481_v47 = vrot.slane %v1439_v9, 2 }
 0x1e3   : > { %v1413_v16 = vpop.f32.mrf.mxu2  ;;  %v1426_v19 = vpop.f32.mrf.mxu3 }
 0x1e4   : > { %3229 = vpow2.f32 %v2998_v10  ;;  %v2999_v21 = vmul.f32 -1.442695, %v1460_v11  ;;  %v3000_v22 = vmul.f32 -1.442695, %v1484_v13 }
 0x1e6   : > { %3231 = vpow2.f32 %v2999_v21 }
 0x1e7   : > { %3233 = vpow2.f32 %v3000_v22 }
 0x1ea   : > { %v3230_v18 = vpop.eup %3229 }
 0x1eb   : > { %v1443_v33 = vadd.f32 1.0, %v3230_v18 }
 0x1ec   : > { %v3232_v37 = vpop.eup %3231 }
 0x1ed   : > { %v3234_v36 = vpop.eup %3233  ;;  %3235 = vrcp.f32 %v1443_v33  ;;  %v1465_v34 = vadd.f32 1.0, %v3232_v37  ;;  %v1455_v48 = vand.u32 2147483648, %v1443_v33  ;;  %v1453_v57 = vand.u32 2147483647, %v1443_v33 }
 0x1ee   : > { %v1489_v42 = vadd.f32 1.0, %v3234_v36  ;;  %vm1449_vm3 = vweird.f32 %v1443_v33 }
 0x1ef   : > { %3237 = vrcp.f32 %v1465_v34  ;;  %v1477_v61 = vand.u32 2147483648, %v1465_v34  ;;  %v1475_v0 = vand.u32 2147483647, %v1465_v34  ;;  %v1456_v1 = vor.u32 1.1754944e-38, %v1455_v48 }
 0x1f0   : > { %3239 = vrcp.f32 %v1489_v42  ;;  %vm1454_vm6 = vcmp.eq.f32.partialorder %v1453_v57, 8.507059e+37  ;;  %vm1471_vm7 = vweird.f32 %v1465_v34  ;;  %vm1495_vm11 = vweird.f32 %v1489_v42 }
 0x1f1   : > { %3241 = vtanh.f32 %v1481_v47  ;;  %v1478_v16 = vor.u32 1.1754944e-38, %v1477_v61  ;;  %vm1476_vm9 = vcmp.eq.f32.partialorder %v1475_v0, 8.507059e+37  ;;  %v1501_v47 = vand.u32 2147483648, %v1489_v42 }
 0x1f3   : > { %v3236_v41 = vpop.eup %3235 }
 0x1f4   : > { %v1445_v45 = vmul.f32 %v3236_v41, %v1443_v33  ;;  %vm1450_vm15 = vweird.f32 %v3236_v41 }
 0x1f5   : > { %v3238_v46 = vpop.eup %3237  ;;  %vm1451_vm5 = vmor %vm1449_vm3, %vm1450_vm15 }
 0x1f6   : > { %v3240_v35 = vpop.eup %3239  ;;  %v1446_v43 = vsub.f32 1.0, %v1445_v45  ;;  %v1467_v30 = vmul.f32 %v3238_v46, %v1465_v34  ;;  %vm1472_vm4 = vweird.f32 %v3238_v46  ;;  %v1499_v34 = vand.u32 2147483647, %v1489_v42 }
 0x1f7   : > { %v1491_v49 = vmul.f32 %v3240_v35, %v1489_v42  ;;  %vm1473_vm8 = vmor %vm1471_vm7, %vm1472_vm4  ;;  %v3242_v21 = vpop.eup %3241  ;;  %vm1496_vm10 = vweird.f32 %v3240_v35 }
 0x1f8   : > { %v1447_v53 = vmul.f32 %v3236_v41, %v1446_v43  ;;  %v1468_v58 = vsub.f32 1.0, %v1467_v30  ;;  %vm1497_vm12 = vmor %vm1495_vm11, %vm1496_vm10  ;;  %v1502_v43 = vor.u32 1.1754944e-38, %v1501_v47  ;;  %vm1500_vm13 = vcmp.eq.f32.partialorder %v1499_v34, 8.507059e+37 }
 0x1f9   : > { %v1492_v10 = vsub.f32 1.0, %v1491_v49 }
 0x1fa   : > { %v1448_v62 = vadd.f32 %v3236_v41, %v1447_v53  ;;  %v1469_v63 = vmul.f32 %v3238_v46, %v1468_v58 }
 0x1fb   : > { %v1493_v18 = vmul.f32 %v3240_v35, %v1492_v10  ;;  %v1511_v10 = vld [vmem:[#allocation2 + $0x2] ss:$8 sm:$0xf] }
 0x1fc   : > { %v1452_v9 = vsel %vm1451_vm5, %v3236_v41, %v1448_v62  ;;  %v1470_v11 = vadd.f32 %v3238_v46, %v1469_v63 }
 0x1fd   : > { %v1457_v13 = vsel %vm1454_vm6, %v1456_v1, %v1452_v9  ;;  %v1494_v45 = vadd.f32 %v3240_v35, %v1493_v18 }
 0x1fe   : > { %v1474_v19 = vsel %vm1473_vm8, %v3238_v46, %v1470_v11  ;;  %v1506_v37 = vmul.f32 %v3242_v21, %v1457_v13 }
 0x1ff   : > { %v1479_v22 = vsel %vm1476_vm9, %v1478_v16, %v1474_v19  ;;  %v1498_v41 = vsel %vm1497_vm12, %v3240_v35, %v1494_v45 }
 0x200   : > { %v1505_v33 = vmul.f32 %v1479_v22, %v3784_v31  ;;  %v1503_v30 = vsel %vm1500_vm13, %v1502_v43, %v1498_v41 }
 0x202   : > { %v3823_v36 = vadd.f32 %v1506_v37, %v1505_v33 }
 0x204   : > { %3243 = vtanh.f32 %v3823_v36 }
 0x20a   : > { %v3244_v46 = vpop.eup %3243 }
 0x20b   : > { %v1509_v48 = vmul.f32 %v3244_v46, %v1503_v30 }
 0x20d   : > { %v1512_v49 = vpack.c.bf16 %v1509_v48, %v1509_v48 }
 0x20f   : > { %1521 = vmatmul.bf16.vlgmr.msrb.gmra.mxu0 %v1512_v49  ;;  %1534 = vmatmul.bf16.vlgmr.msrb.gmra.mxu1 %v1512_v49 }
 0x210   : > { %1547 = vmatmul.bf16.vlgmr.msrb.gmra.mxu2 %v1512_v49  ;;  %1560 = vmatmul.bf16.vlgmr.msrb.gmra.mxu3 %v1512_v49 }
 0x211   : > { %1787 = vmatpush.bf16.msrb.mxu0 %v3614_v54  ;;  %1800 = vmatpush.bf16.msrb.mxu1 %v3616_v55 }
 0x212   : > { %1813 = vmatpush.bf16.msrb.mxu2 %v3618_v56  ;;  %1826 = vmatpush.bf16.msrb.mxu3 %v3620_v60 }
 0x215   : > { %1788 = vmatpush.bf16.msrb.mxu0 %v3623_v2  ;;  %1801 = vmatpush.bf16.msrb.mxu1 %v3627_v3 }
 0x216   : > { %1814 = vmatpush.bf16.msrb.mxu2 %v3629_v4  ;;  %1827 = vmatpush.bf16.msrb.mxu3 %v3633_v8 }
 0x219   : > { %1789 = vmatpush.bf16.msrb.mxu0 %v3638_v14  ;;  %1802 = vmatpush.bf16.msrb.mxu1 %v3642_v20 }
 0x21a   : > { %1815 = vmatpush.bf16.msrb.mxu2 %v3644_v15  ;;  %1828 = vmatpush.bf16.msrb.mxu3 %v3648_v17 }
 0x21d   : > { %1790 = vmatpush.bf16.msrb.mxu0 %v3651_v27  ;;  %1803 = vmatpush.bf16.msrb.mxu1 %v3655_v28 }
 0x21e   : > { %1816 = vmatpush.bf16.msrb.mxu2 %v3657_v29  ;;  %1829 = vmatpush.bf16.msrb.mxu3 %v3660_v32 }
 0x221   : > { %1791 = vmatpush.bf16.msrb.mxu0 %v3663_v38  ;;  %1804 = vmatpush.bf16.msrb.mxu1 %v3667_v39 }
 0x222   : > { %1817 = vmatpush.bf16.msrb.mxu2 %v3669_v40  ;;  %1830 = vmatpush.bf16.msrb.mxu3 %v3672_v44 }
 0x225   : > { %1792 = vmatpush.bf16.msrb.mxu0 %v3675_v50  ;;  %1805 = vmatpush.bf16.msrb.mxu1 %v3679_v51 }
 0x226   : > { %1818 = vmatpush.bf16.msrb.mxu2 %v3681_v52  ;;  %1831 = vmatpush.bf16.msrb.mxu3 %v3684_v59 }
 0x229   : > { %1793 = vmatpush.bf16.msrb.mxu0 %v3687_v5  ;;  %1806 = vmatpush.bf16.msrb.mxu1 %v3691_v6 }
 0x22a   : > { %1819 = vmatpush.bf16.msrb.mxu2 %v3693_v7  ;;  %1832 = vmatpush.bf16.msrb.mxu3 %v3696_v12 }
 0x22d   : > { %1794 = vmatpush.bf16.msrb.mxu0 %v3699_v23  ;;  %1807 = vmatpush.bf16.msrb.mxu1 %v3703_v24 }
 0x22e   : > { %1820 = vmatpush.bf16.msrb.mxu2 %v3705_v25  ;;  %1833 = vmatpush.bf16.msrb.mxu3 %v3708_v26 }
 0x28c   : > { %v1522_v31 = vpop.f32.mrf.mxu0  ;;  %v1535_v42 = vpop.f32.mrf.mxu1 }
 0x28d   : > { %v1569_v35 = vrot.slane %v1535_v42, 7 }
 0x28f   : > { %v1572_v0 = vsel %vm1295_vm0, %v1522_v31, %v1569_v35 }
 0x293   : > { %v1548_v53 = vpop.f32.mrf.mxu2  ;;  %v1561_v57 = vpop.f32.mrf.mxu3 }
 0x294   : > { %v1570_v58 = vrot.slane %v1548_v53, 6  ;;  %v1571_v61 = vrot.slane %v1561_v57, 5  ;;  %v1524_v62 = vpop.f32.mrf.mxu0  ;;  %v1537_v63 = vpop.f32.mrf.mxu1 }
 0x296   : > { %v1573_v1 = vsel %vm1297_vm1, %v1570_v58, %v1571_v61 }
 0x297   : > { %v1574_v9 = vsel %vm1299_vm2, %v1572_v0, %v1573_v1 }
 0x298   : > { %v1576_v11 = vadd.f32 %v1574_v9, %v1511_v10 }
 0x29a   : > { %v3001_v13 = vmul.f32 -1.442695, %v1576_v11  ;;  %v1597_v16 = vrot.slane %v1576_v11, 1  ;;  %v1621_v19 = vrot.slane %v1576_v11, 3  ;;  %v1618_v49 = vrot.slane %v1576_v11, 2 }
 0x29b   : > { %v1550_v21 = vpop.f32.mrf.mxu2  ;;  %v1563_v22 = vpop.f32.mrf.mxu3 }
 0x29c   : > { %3245 = vpow2.f32 %v3001_v13  ;;  %v3002_v18 = vmul.f32 -1.442695, %v1597_v16  ;;  %v3003_v33 = vmul.f32 -1.442695, %v1621_v19 }
 0x29e   : > { %3247 = vpow2.f32 %v3002_v18 }
 0x29f   : > { %3249 = vpow2.f32 %v3003_v33 }
 0x2a2   : > { %v3246_v37 = vpop.eup %3245 }
 0x2a3   : > { %v1580_v45 = vadd.f32 1.0, %v3246_v37 }
 0x2a4   : > { %v3248_v47 = vpop.eup %3247 }
 0x2a5   : > { %v3250_v34 = vpop.eup %3249  ;;  %3251 = vrcp.f32 %v1580_v45  ;;  %v1602_v41 = vadd.f32 1.0, %v3248_v47  ;;  %v1592_v53 = vand.u32 2147483648, %v1580_v45  ;;  %v1590_v61 = vand.u32 2147483647, %v1580_v45 }
 0x2a6   : > { %v1626_v43 = vadd.f32 1.0, %v3250_v34  ;;  %vm1586_vm15 = vweird.f32 %v1580_v45 }
 0x2a7   : > { %3253 = vrcp.f32 %v1602_v41  ;;  %v1614_v63 = vand.u32 2147483648, %v1602_v41  ;;  %v1612_v10 = vand.u32 2147483647, %v1602_v41  ;;  %v1593_v9 = vor.u32 1.1754944e-38, %v1592_v53 }
 0x2a8   : > { %3255 = vrcp.f32 %v1626_v43  ;;  %vm1591_vm5 = vcmp.eq.f32.partialorder %v1590_v61, 8.507059e+37  ;;  %vm1608_vm6 = vweird.f32 %v1602_v41  ;;  %vm1632_vm10 = vweird.f32 %v1626_v43 }
 0x2a9   : > { %3257 = vtanh.f32 %v1618_v49  ;;  %v1615_v21 = vor.u32 1.1754944e-38, %v1614_v63  ;;  %vm1613_vm8 = vcmp.eq.f32.partialorder %v1612_v10, 8.507059e+37  ;;  %v1638_v49 = vand.u32 2147483648, %v1626_v43 }
 0x2ab   : > { %v3252_v46 = vpop.eup %3251 }
 0x2ac   : > { %v1582_v30 = vmul.f32 %v3252_v46, %v1580_v45  ;;  %vm1587_vm14 = vweird.f32 %v3252_v46 }
 0x2ad   : > { %v3254_v48 = vpop.eup %3253  ;;  %vm1588_vm4 = vmor %vm1586_vm15, %vm1587_vm14 }
 0x2ae   : > { %v3256_v31 = vpop.eup %3255  ;;  %v1583_v42 = vsub.f32 1.0, %v1582_v30  ;;  %v1604_v35 = vmul.f32 %v3254_v48, %v1602_v41  ;;  %vm1609_vm3 = vweird.f32 %v3254_v48  ;;  %v1636_v41 = vand.u32 2147483647, %v1626_v43 }
 0x2af   : > { %v1628_v57 = vmul.f32 %v3256_v31, %v1626_v43  ;;  %vm1610_vm7 = vmor %vm1608_vm6, %vm1609_vm3  ;;  %v3258_v18 = vpop.eup %3257  ;;  %vm1633_vm9 = vweird.f32 %v3256_v31 }
 0x2b0   : > { %v1584_v58 = vmul.f32 %v3252_v46, %v1583_v42  ;;  %v1605_v62 = vsub.f32 1.0, %v1604_v35  ;;  %vm1634_vm11 = vmor %vm1632_vm10, %vm1633_vm9  ;;  %v1639_v42 = vor.u32 1.1754944e-38, %v1638_v49  ;;  %vm1637_vm12 = vcmp.eq.f32.partialorder %v1636_v41, 8.507059e+37 }
 0x2b1   : > { %v1629_v13 = vsub.f32 1.0, %v1628_v57 }
 0x2b2   : > { %v1585_v0 = vadd.f32 %v3252_v46, %v1584_v58  ;;  %v1606_v1 = vmul.f32 %v3254_v48, %v1605_v62 }
 0x2b3   : > { %v1630_v37 = vmul.f32 %v3256_v31, %v1629_v13  ;;  %v1648_v13 = vld [vmem:[#allocation2 + $0x3] ss:$8 sm:$0xf] }
 0x2b4   : > { %v1589_v11 = vsel %vm1588_vm4, %v3252_v46, %v1585_v0  ;;  %v1607_v16 = vadd.f32 %v3254_v48, %v1606_v1 }
 0x2b5   : > { %v1594_v19 = vsel %vm1591_vm5, %v1593_v9, %v1589_v11  ;;  %v1631_v30 = vadd.f32 %v3256_v31, %v1630_v37 }
 0x2b6   : > { %v1611_v22 = vsel %vm1610_vm7, %v3254_v48, %v1607_v16  ;;  %v1643_v47 = vmul.f32 %v3258_v18, %v1594_v19 }
 0x2b7   : > { %v1616_v33 = vsel %vm1613_vm8, %v1615_v21, %v1611_v22  ;;  %v1635_v46 = vsel %vm1634_vm11, %v3256_v31, %v1631_v30 }
 0x2b8   : > { %v1642_v45 = vmul.f32 %v1616_v33, %v3823_v36  ;;  %v1640_v35 = vsel %vm1637_vm12, %v1639_v42, %v1635_v46 }
 0x2ba   : > { %v3862_v34 = vadd.f32 %v1643_v47, %v1642_v45 }
 0x2bc   : > { %3259 = vtanh.f32 %v3862_v34 }
 0x2c2   : > { %v3260_v48 = vpop.eup %3259 }
 0x2c3   : > { %v1646_v53 = vmul.f32 %v3260_v48, %v1640_v35 }
 0x2c5   : > { %v1649_v57 = vpack.c.bf16 %v1646_v53, %v1646_v53 }
 0x2c7   : > { %1658 = vmatmul.bf16.vlgmr.msra.gmra.mxu0 %v1649_v57  ;;  %1671 = vmatmul.bf16.vlgmr.msra.gmra.mxu1 %v1649_v57 }
 0x2c8   : > { %1684 = vmatmul.bf16.vlgmr.msra.gmra.mxu2 %v1649_v57  ;;  %1697 = vmatmul.bf16.vlgmr.msra.gmra.mxu3 %v1649_v57 }
 0x2c9   : > { %1924 = vmatpush.bf16.msra.mxu0 %v3614_v54  ;;  %1937 = vmatpush.bf16.msra.mxu1 %v3616_v55 }
 0x2ca   : > { %1950 = vmatpush.bf16.msra.mxu2 %v3618_v56  ;;  %1963 = vmatpush.bf16.msra.mxu3 %v3620_v60 }
 0x2cd   : > { %1925 = vmatpush.bf16.msra.mxu0 %v3623_v2  ;;  %1938 = vmatpush.bf16.msra.mxu1 %v3627_v3 }
 0x2ce   : > { %1951 = vmatpush.bf16.msra.mxu2 %v3629_v4  ;;  %1964 = vmatpush.bf16.msra.mxu3 %v3633_v8 }
 0x2d1   : > { %1926 = vmatpush.bf16.msra.mxu0 %v3638_v14  ;;  %1939 = vmatpush.bf16.msra.mxu1 %v3642_v20 }
 0x2d2   : > { %1952 = vmatpush.bf16.msra.mxu2 %v3644_v15  ;;  %1965 = vmatpush.bf16.msra.mxu3 %v3648_v17 }
 0x2d5   : > { %1927 = vmatpush.bf16.msra.mxu0 %v3651_v27  ;;  %1940 = vmatpush.bf16.msra.mxu1 %v3655_v28 }
 0x2d6   : > { %1953 = vmatpush.bf16.msra.mxu2 %v3657_v29  ;;  %1966 = vmatpush.bf16.msra.mxu3 %v3660_v32 }
 0x2d9   : > { %1928 = vmatpush.bf16.msra.mxu0 %v3663_v38  ;;  %1941 = vmatpush.bf16.msra.mxu1 %v3667_v39 }
 0x2da   : > { %1954 = vmatpush.bf16.msra.mxu2 %v3669_v40  ;;  %1967 = vmatpush.bf16.msra.mxu3 %v3672_v44 }
 0x2dd   : > { %1929 = vmatpush.bf16.msra.mxu0 %v3675_v50  ;;  %1942 = vmatpush.bf16.msra.mxu1 %v3679_v51 }
 0x2de   : > { %1955 = vmatpush.bf16.msra.mxu2 %v3681_v52  ;;  %1968 = vmatpush.bf16.msra.mxu3 %v3684_v59 }
 0x2e1   : > { %1930 = vmatpush.bf16.msra.mxu0 %v3687_v5  ;;  %1943 = vmatpush.bf16.msra.mxu1 %v3691_v6 }
 0x2e2   : > { %1956 = vmatpush.bf16.msra.mxu2 %v3693_v7  ;;  %1969 = vmatpush.bf16.msra.mxu3 %v3696_v12 }
 0x2e5   : > { %1931 = vmatpush.bf16.msra.mxu0 %v3699_v23  ;;  %1944 = vmatpush.bf16.msra.mxu1 %v3703_v24 }
 0x2e6   : > { %1957 = vmatpush.bf16.msra.mxu2 %v3705_v25  ;;  %1970 = vmatpush.bf16.msra.mxu3 %v3708_v26 }
 0x344   : > { %v1659_v36 = vpop.f32.mrf.mxu0  ;;  %v1672_v43 = vpop.f32.mrf.mxu1 }
 0x345   : > { %v1706_v31 = vrot.slane %v1672_v43, 7 }
 0x347   : > { %v1709_v10 = vsel %vm1295_vm0, %v1659_v36, %v1706_v31 }
 0x34b   : > { %v1685_v58 = vpop.f32.mrf.mxu2  ;;  %v1698_v61 = vpop.f32.mrf.mxu3 }
 0x34c   : > { %v1707_v62 = vrot.slane %v1685_v58, 6  ;;  %v1708_v63 = vrot.slane %v1698_v61, 5  ;;  %v1661_v0 = vpop.f32.mrf.mxu0  ;;  %v1674_v1 = vpop.f32.mrf.mxu1 }
 0x34e   : > { %v1710_v9 = vsel %vm1297_vm1, %v1707_v62, %v1708_v63 }
 0x34f   : > { %v1711_v11 = vsel %vm1299_vm2, %v1709_v10, %v1710_v9 }
 0x350   : > { %v1713_v16 = vadd.f32 %v1711_v11, %v1648_v13 }
 0x352   : > { %v3004_v19 = vmul.f32 -1.442695, %v1713_v16  ;;  %v1734_v21 = vrot.slane %v1713_v16, 1  ;;  %v1758_v22 = vrot.slane %v1713_v16, 3  ;;  %v1755_v57 = vrot.slane %v1713_v16, 2 }
 0x353   : > { %v1687_v18 = vpop.f32.mrf.mxu2  ;;  %v1700_v33 = vpop.f32.mrf.mxu3 }
 0x354   : > { %3261 = vpow2.f32 %v3004_v19  ;;  %v3005_v37 = vmul.f32 -1.442695, %v1734_v21  ;;  %v3006_v45 = vmul.f32 -1.442695, %v1758_v22 }
 0x356   : > { %3263 = vpow2.f32 %v3005_v37 }
 0x357   : > { %3265 = vpow2.f32 %v3006_v45 }
 0x35a   : > { %v3262_v47 = vpop.eup %3261 }
 0x35b   : > { %v1717_v30 = vadd.f32 1.0, %v3262_v47 }
 0x35c   : > { %v3264_v49 = vpop.eup %3263 }
 0x35d   : > { %v3266_v41 = vpop.eup %3265  ;;  %3267 = vrcp.f32 %v1717_v30  ;;  %v1739_v46 = vadd.f32 1.0, %v3264_v49  ;;  %v1729_v58 = vand.u32 2147483648, %v1717_v30  ;;  %v1727_v63 = vand.u32 2147483647, %v1717_v30 }
 0x35e   : > { %v1763_v42 = vadd.f32 1.0, %v3266_v41  ;;  %vm1723_vm14 = vweird.f32 %v1717_v30 }
 0x35f   : > { %3269 = vrcp.f32 %v1739_v46  ;;  %v1751_v1 = vand.u32 2147483648, %v1739_v46  ;;  %v1749_v13 = vand.u32 2147483647, %v1739_v46  ;;  %v1730_v11 = vor.u32 1.1754944e-38, %v1729_v58 }
 0x360   : > { %3271 = vrcp.f32 %v1763_v42  ;;  %vm1728_vm4 = vcmp.eq.f32.partialorder %v1727_v63, 8.507059e+37  ;;  %vm1745_vm5 = vweird.f32 %v1739_v46  ;;  %vm1769_vm9 = vweird.f32 %v1763_v42 }
 0x361   : > { %3273 = vtanh.f32 %v1755_v57  ;;  %v1752_v18 = vor.u32 1.1754944e-38, %v1751_v1  ;;  %vm1750_vm7 = vcmp.eq.f32.partialorder %v1749_v13, 8.507059e+37  ;;  %v1775_v57 = vand.u32 2147483648, %v1763_v42 }
 0x363   : > { %v3268_v48 = vpop.eup %3267 }
 0x364   : > { %v1719_v35 = vmul.f32 %v3268_v48, %v1717_v30  ;;  %vm1724_vm13 = vweird.f32 %v3268_v48 }
 0x365   : > { %v3270_v53 = vpop.eup %3269  ;;  %vm1725_vm3 = vmor %vm1723_vm14, %vm1724_vm13 }
 0x366   : > { %v3272_v36 = vpop.eup %3271  ;;  %v1720_v43 = vsub.f32 1.0, %v1719_v35  ;;  %v1741_v31 = vmul.f32 %v3270_v53, %v1739_v46  ;;  %vm1746_vm15 = vweird.f32 %v3270_v53  ;;  %v1773_v46 = vand.u32 2147483647, %v1763_v42 }
 0x367   : > { %v1765_v61 = vmul.f32 %v3272_v36, %v1763_v42  ;;  %vm1747_vm6 = vmor %vm1745_vm5, %vm1746_vm15  ;;  %v3274_v37 = vpop.eup %3273  ;;  %vm1770_vm8 = vweird.f32 %v3272_v36 }
 0x368   : > { %v1721_v62 = vmul.f32 %v3268_v48, %v1720_v43  ;;  %v1742_v0 = vsub.f32 1.0, %v1741_v31  ;;  %vm1771_vm10 = vmor %vm1769_vm9, %vm1770_vm8  ;;  %v1776_v43 = vor.u32 1.1754944e-38, %v1775_v57  ;;  %vm1774_vm11 = vcmp.eq.f32.partialorder %v1773_v46, 8.507059e+37 }
 0x369   : > { %v1766_v19 = vsub.f32 1.0, %v1765_v61 }
 0x36a   : > { %v1722_v10 = vadd.f32 %v3268_v48, %v1721_v62  ;;  %v1743_v9 = vmul.f32 %v3270_v53, %v1742_v0 }
 0x36b   : > { %v1767_v47 = vmul.f32 %v3272_v36, %v1766_v19  ;;  %v1785_v19 = vld [vmem:[#allocation2 + $0x4] ss:$8 sm:$0xf] }
 0x36c   : > { %v1726_v16 = vsel %vm1725_vm3, %v3268_v48, %v1722_v10  ;;  %v1744_v21 = vadd.f32 %v3270_v53, %v1743_v9 }
 0x36d   : > { %v1731_v22 = vsel %vm1728_vm4, %v1730_v11, %v1726_v16  ;;  %v1768_v35 = vadd.f32 %v3272_v36, %v1767_v47 }
 0x36e   : > { %v1748_v33 = vsel %vm1747_vm6, %v3270_v53, %v1744_v21  ;;  %v1780_v49 = vmul.f32 %v3274_v37, %v1731_v22 }
 0x36f   : > { %v1753_v45 = vsel %vm1750_vm7, %v1752_v18, %v1748_v33  ;;  %v1772_v48 = vsel %vm1771_vm10, %v3272_v36, %v1768_v35 }
 0x370   : > { %v1779_v30 = vmul.f32 %v1753_v45, %v3862_v34  ;;  %v1777_v31 = vsel %vm1774_vm11, %v1776_v43, %v1772_v48 }
 0x372   : > { %v3901_v41 = vadd.f32 %v1780_v49, %v1779_v30 }
 0x374   : > { %3275 = vtanh.f32 %v3901_v41 }
 0x37a   : > { %v3276_v53 = vpop.eup %3275 }
 0x37b   : > { %v1783_v58 = vmul.f32 %v3276_v53, %v1777_v31 }
 0x37d   : > { %v1786_v61 = vpack.c.bf16 %v1783_v58, %v1783_v58 }
 0x37f   : > { %1795 = vmatmul.bf16.vlgmr.msrb.gmra.mxu0 %v1786_v61  ;;  %1808 = vmatmul.bf16.vlgmr.msrb.gmra.mxu1 %v1786_v61 }
 0x380   : > { %1821 = vmatmul.bf16.vlgmr.msrb.gmra.mxu2 %v1786_v61  ;;  %1834 = vmatmul.bf16.vlgmr.msrb.gmra.mxu3 %v1786_v61 }
 0x381   : > { %2061 = vmatpush.bf16.msrb.mxu0 %v3614_v54  ;;  %2074 = vmatpush.bf16.msrb.mxu1 %v3616_v55 }
 0x382   : > { %2087 = vmatpush.bf16.msrb.mxu2 %v3618_v56  ;;  %2100 = vmatpush.bf16.msrb.mxu3 %v3620_v60 }
 0x385   : > { %2062 = vmatpush.bf16.msrb.mxu0 %v3623_v2  ;;  %2075 = vmatpush.bf16.msrb.mxu1 %v3627_v3 }
 0x386   : > { %2088 = vmatpush.bf16.msrb.mxu2 %v3629_v4  ;;  %2101 = vmatpush.bf16.msrb.mxu3 %v3633_v8 }
 0x389   : > { %2063 = vmatpush.bf16.msrb.mxu0 %v3638_v14  ;;  %2076 = vmatpush.bf16.msrb.mxu1 %v3642_v20 }
 0x38a   : > { %2089 = vmatpush.bf16.msrb.mxu2 %v3644_v15  ;;  %2102 = vmatpush.bf16.msrb.mxu3 %v3648_v17 }
 0x38d   : > { %2064 = vmatpush.bf16.msrb.mxu0 %v3651_v27  ;;  %2077 = vmatpush.bf16.msrb.mxu1 %v3655_v28 }
 0x38e   : > { %2090 = vmatpush.bf16.msrb.mxu2 %v3657_v29  ;;  %2103 = vmatpush.bf16.msrb.mxu3 %v3660_v32 }
 0x391   : > { %2065 = vmatpush.bf16.msrb.mxu0 %v3663_v38  ;;  %2078 = vmatpush.bf16.msrb.mxu1 %v3667_v39 }
 0x392   : > { %2091 = vmatpush.bf16.msrb.mxu2 %v3669_v40  ;;  %2104 = vmatpush.bf16.msrb.mxu3 %v3672_v44 }
 0x395   : > { %2066 = vmatpush.bf16.msrb.mxu0 %v3675_v50  ;;  %2079 = vmatpush.bf16.msrb.mxu1 %v3679_v51 }
 0x396   : > { %2092 = vmatpush.bf16.msrb.mxu2 %v3681_v52  ;;  %2105 = vmatpush.bf16.msrb.mxu3 %v3684_v59 }
 0x399   : > { %2067 = vmatpush.bf16.msrb.mxu0 %v3687_v5  ;;  %2080 = vmatpush.bf16.msrb.mxu1 %v3691_v6 }
 0x39a   : > { %2093 = vmatpush.bf16.msrb.mxu2 %v3693_v7  ;;  %2106 = vmatpush.bf16.msrb.mxu3 %v3696_v12 }
 0x39d   : > { %2068 = vmatpush.bf16.msrb.mxu0 %v3699_v23  ;;  %2081 = vmatpush.bf16.msrb.mxu1 %v3703_v24 }
 0x39e   : > { %2094 = vmatpush.bf16.msrb.mxu2 %v3705_v25  ;;  %2107 = vmatpush.bf16.msrb.mxu3 %v3708_v26 }
 0x3fc   : > { %v1796_v34 = vpop.f32.mrf.mxu0  ;;  %v1809_v42 = vpop.f32.mrf.mxu1 }
 0x3fd   : > { %v1843_v36 = vrot.slane %v1809_v42, 7 }
 0x3ff   : > { %v1846_v13 = vsel %vm1295_vm0, %v1796_v34, %v1843_v36 }
 0x403   : > { %v1822_v62 = vpop.f32.mrf.mxu2  ;;  %v1835_v63 = vpop.f32.mrf.mxu3 }
 0x404   : > { %v1844_v0 = vrot.slane %v1822_v62, 6  ;;  %v1845_v1 = vrot.slane %v1835_v63, 5  ;;  %v1798_v10 = vpop.f32.mrf.mxu0  ;;  %v1811_v9 = vpop.f32.mrf.mxu1 }
 0x406   : > { %v1847_v11 = vsel %vm1297_vm1, %v1844_v0, %v1845_v1 }
 0x407   : > { %v1848_v16 = vsel %vm1299_vm2, %v1846_v13, %v1847_v11 }
 0x408   : > { %v1850_v21 = vadd.f32 %v1848_v16, %v1785_v19 }
 0x40a   : > { %v3007_v22 = vmul.f32 -1.442695, %v1850_v21  ;;  %v1871_v18 = vrot.slane %v1850_v21, 1  ;;  %v1895_v33 = vrot.slane %v1850_v21, 3  ;;  %v1892_v61 = vrot.slane %v1850_v21, 2 }
 0x40b   : > { %v1824_v37 = vpop.f32.mrf.mxu2  ;;  %v1837_v45 = vpop.f32.mrf.mxu3 }
 0x40c   : > { %3277 = vpow2.f32 %v3007_v22  ;;  %v3008_v47 = vmul.f32 -1.442695, %v1871_v18  ;;  %v3009_v30 = vmul.f32 -1.442695, %v1895_v33 }
 0x40e   : > { %3279 = vpow2.f32 %v3008_v47 }
 0x40f   : > { %3281 = vpow2.f32 %v3009_v30 }
 0x412   : > { %v3278_v49 = vpop.eup %3277 }
 0x413   : > { %v1854_v35 = vadd.f32 1.0, %v3278_v49 }
 0x414   : > { %v3280_v57 = vpop.eup %3279 }
 0x415   : > { %v3282_v46 = vpop.eup %3281  ;;  %3283 = vrcp.f32 %v1854_v35  ;;  %v1876_v48 = vadd.f32 1.0, %v3280_v57  ;;  %v1866_v62 = vand.u32 2147483648, %v1854_v35  ;;  %v1864_v1 = vand.u32 2147483647, %v1854_v35 }
 0x416   : > { %v1900_v43 = vadd.f32 1.0, %v3282_v46  ;;  %vm1860_vm13 = vweird.f32 %v1854_v35 }
 0x417   : > { %3285 = vrcp.f32 %v1876_v48  ;;  %v1888_v9 = vand.u32 2147483648, %v1876_v48  ;;  %v1886_v19 = vand.u32 2147483647, %v1876_v48  ;;  %v1867_v16 = vor.u32 1.1754944e-38, %v1866_v62 }
 0x418   : > { %3287 = vrcp.f32 %v1900_v43  ;;  %vm1865_vm3 = vcmp.eq.f32.partialorder %v1864_v1, 8.507059e+37  ;;  %vm1882_vm4 = vweird.f32 %v1876_v48  ;;  %vm1906_vm8 = vweird.f32 %v1900_v43 }
 0x419   : > { %3289 = vtanh.f32 %v1892_v61  ;;  %v1889_v37 = vor.u32 1.1754944e-38, %v1888_v9  ;;  %vm1887_vm6 = vcmp.eq.f32.partialorder %v1886_v19, 8.507059e+37  ;;  %v1912_v61 = vand.u32 2147483648, %v1900_v43 }
 0x41b   : > { %v3284_v53 = vpop.eup %3283 }
 0x41c   : > { %v1856_v31 = vmul.f32 %v3284_v53, %v1854_v35  ;;  %vm1861_vm12 = vweird.f32 %v3284_v53 }
 0x41d   : > { %v3286_v58 = vpop.eup %3285  ;;  %vm1862_vm15 = vmor %vm1860_vm13, %vm1861_vm12 }
 0x41e   : > { %v3288_v34 = vpop.eup %3287  ;;  %v1857_v42 = vsub.f32 1.0, %v1856_v31  ;;  %v1878_v36 = vmul.f32 %v3286_v58, %v1876_v48  ;;  %vm1883_vm14 = vweird.f32 %v3286_v58  ;;  %v1910_v48 = vand.u32 2147483647, %v1900_v43 }
 0x41f   : > { %v1902_v63 = vmul.f32 %v3288_v34, %v1900_v43  ;;  %vm1884_vm5 = vmor %vm1882_vm4, %vm1883_vm14  ;;  %v3290_v47 = vpop.eup %3289  ;;  %vm1907_vm7 = vweird.f32 %v3288_v34 }
 0x420   : > { %v1858_v0 = vmul.f32 %v3284_v53, %v1857_v42  ;;  %v1879_v10 = vsub.f32 1.0, %v1878_v36  ;;  %vm1908_vm9 = vmor %vm1906_vm8, %vm1907_vm7  ;;  %v1913_v42 = vor.u32 1.1754944e-38, %v1912_v61  ;;  %vm1911_vm10 = vcmp.eq.f32.partialorder %v1910_v48, 8.507059e+37 }
 0x421   : > { %v1903_v22 = vsub.f32 1.0, %v1902_v63 }
 0x422   : > { %v1859_v13 = vadd.f32 %v3284_v53, %v1858_v0  ;;  %v1880_v11 = vmul.f32 %v3286_v58, %v1879_v10 }
 0x423   : > { %v1904_v49 = vmul.f32 %v3288_v34, %v1903_v22 }
 0x424   : > { %v1863_v21 = vsel %vm1862_vm15, %v3284_v53, %v1859_v13  ;;  %v1881_v18 = vadd.f32 %v3286_v58, %v1880_v11 }
 0x425   : > { %v1868_v33 = vsel %vm1865_vm3, %v1867_v16, %v1863_v21  ;;  %v1905_v31 = vadd.f32 %v3288_v34, %v1904_v49 }
 0x426   : > { %v1885_v45 = vsel %vm1884_vm5, %v3286_v58, %v1881_v18  ;;  %v1917_v57 = vmul.f32 %v3290_v47, %v1868_v33 }
 0x427   : > { %v1890_v30 = vsel %vm1887_vm6, %v1889_v37, %v1885_v45  ;;  %v1909_v53 = vsel %vm1908_vm9, %v3288_v34, %v1905_v31 }
 0x428   : > { %v1916_v35 = vmul.f32 %v1890_v30, %v3901_v41  ;;  %v1914_v36 = vsel %vm1911_vm10, %v1913_v42, %v1909_v53 }
 0x42a   : > { %v3940_v46 = vadd.f32 %v1917_v57, %v1916_v35 }
 0x42c   : > { %3291 = vtanh.f32 %v3940_v46 }
 0x432   : > { %v3292_v58 = vpop.eup %3291 }
 0x433   : > { %v1920_v62 = vmul.f32 %v3292_v58, %v1914_v36 }
 0x435   : > { %v1923_v63 = vpack.c.bf16 %v1920_v62, %v1920_v62 }
 0x437   : > { %1932 = vmatmul.bf16.vlgmr.msra.gmra.mxu0 %v1923_v63  ;;  %1945 = vmatmul.bf16.vlgmr.msra.gmra.mxu1 %v1923_v63 }
 0x438   : > { %1958 = vmatmul.bf16.vlgmr.msra.gmra.mxu2 %v1923_v63  ;;  %1971 = vmatmul.bf16.vlgmr.msra.gmra.mxu3 %v1923_v63 }
 0x439   : > { %2198 = vmatpush.bf16.msra.mxu0 %v3614_v54  ;;  %2211 = vmatpush.bf16.msra.mxu1 %v3616_v55 }
 0x43a   : > { %2224 = vmatpush.bf16.msra.mxu2 %v3618_v56  ;;  %2237 = vmatpush.bf16.msra.mxu3 %v3620_v60 }
 0x43d   : > { %2199 = vmatpush.bf16.msra.mxu0 %v3623_v2  ;;  %2212 = vmatpush.bf16.msra.mxu1 %v3627_v3 }
 0x43e   : > { %2225 = vmatpush.bf16.msra.mxu2 %v3629_v4  ;;  %2238 = vmatpush.bf16.msra.mxu3 %v3633_v8 }
 0x441   : > { %2200 = vmatpush.bf16.msra.mxu0 %v3638_v14  ;;  %2213 = vmatpush.bf16.msra.mxu1 %v3642_v20 }
 0x442   : > { %2226 = vmatpush.bf16.msra.mxu2 %v3644_v15  ;;  %2239 = vmatpush.bf16.msra.mxu3 %v3648_v17  ;;  %v1922_v17 = vld [vmem:[#allocation2 + $0x5] ss:$8 sm:$0xf] }
 0x445   : > { %2201 = vmatpush.bf16.msra.mxu0 %v3651_v27  ;;  %2214 = vmatpush.bf16.msra.mxu1 %v3655_v28 }
 0x446   : > { %2227 = vmatpush.bf16.msra.mxu2 %v3657_v29  ;;  %2240 = vmatpush.bf16.msra.mxu3 %v3660_v32 }
 0x449   : > { %2202 = vmatpush.bf16.msra.mxu0 %v3663_v38  ;;  %2215 = vmatpush.bf16.msra.mxu1 %v3667_v39 }
 0x44a   : > { %2228 = vmatpush.bf16.msra.mxu2 %v3669_v40  ;;  %2241 = vmatpush.bf16.msra.mxu3 %v3672_v44 }
 0x44d   : > { %2203 = vmatpush.bf16.msra.mxu0 %v3675_v50  ;;  %2216 = vmatpush.bf16.msra.mxu1 %v3679_v51 }
 0x44e   : > { %2229 = vmatpush.bf16.msra.mxu2 %v3681_v52  ;;  %2242 = vmatpush.bf16.msra.mxu3 %v3684_v59 }
 0x451   : > { %2204 = vmatpush.bf16.msra.mxu0 %v3687_v5  ;;  %2217 = vmatpush.bf16.msra.mxu1 %v3691_v6 }
 0x452   : > { %2230 = vmatpush.bf16.msra.mxu2 %v3693_v7  ;;  %2243 = vmatpush.bf16.msra.mxu3 %v3696_v12 }
 0x455   : > { %2205 = vmatpush.bf16.msra.mxu0 %v3699_v23  ;;  %2218 = vmatpush.bf16.msra.mxu1 %v3703_v24 }
 0x456   : > { %2231 = vmatpush.bf16.msra.mxu2 %v3705_v25  ;;  %2244 = vmatpush.bf16.msra.mxu3 %v3708_v26 }
 0x4b4   : > { %v1933_v54 = vpop.f32.mrf.mxu0  ;;  %v1946_v55 = vpop.f32.mrf.mxu1 }
 0x4b5   : > { %v1980_v56 = vrot.slane %v1946_v55, 7 }
 0x4b7   : > { %v1983_v20 = vsel %vm1295_vm0, %v1933_v54, %v1980_v56 }
 0x4bb   : > { %v1959_v60 = vpop.f32.mrf.mxu2  ;;  %v1972_v2 = vpop.f32.mrf.mxu3 }
 0x4bc   : > { %v1981_v3 = vrot.slane %v1959_v60, 6  ;;  %v1982_v4 = vrot.slane %v1972_v2, 5  ;;  %v1935_v8 = vpop.f32.mrf.mxu0  ;;  %v1948_v14 = vpop.f32.mrf.mxu1 }
 0x4be   : > { %v1984_v15 = vsel %vm1297_vm1, %v1981_v3, %v1982_v4 }
 0x4bf   : > { %v1985_v27 = vsel %vm1299_vm2, %v1983_v20, %v1984_v15 }
 0x4c0   : > { %v1987_v28 = vadd.f32 %v1985_v27, %v1922_v17  ;;  %v2059_v27 = vld [vmem:[#allocation2 + $0x6] ss:$8 sm:$0xf] }
 0x4c2   : > { %v3010_v29 = vmul.f32 -1.442695, %v1987_v28  ;;  %v2008_v32 = vrot.slane %v1987_v28, 1  ;;  %v2032_v38 = vrot.slane %v1987_v28, 3  ;;  %v2029_v25 = vrot.slane %v1987_v28, 2 }
 0x4c3   : > { %v1961_v39 = vpop.f32.mrf.mxu2  ;;  %v1974_v40 = vpop.f32.mrf.mxu3 }
 0x4c4   : > { %3293 = vpow2.f32 %v3010_v29  ;;  %v3011_v44 = vmul.f32 -1.442695, %v2008_v32  ;;  %v3012_v50 = vmul.f32 -1.442695, %v2032_v38 }
 0x4c6   : > { %3295 = vpow2.f32 %v3011_v44 }
 0x4c7   : > { %3297 = vpow2.f32 %v3012_v50 }
 0x4ca   : > { %v3294_v51 = vpop.eup %3293 }
 0x4cb   : > { %v1991_v52 = vadd.f32 1.0, %v3294_v51 }
 0x4cc   : > { %v3296_v59 = vpop.eup %3295 }
 0x4cd   : > { %v3298_v5 = vpop.eup %3297  ;;  %3299 = vrcp.f32 %v1991_v52  ;;  %v2013_v6 = vadd.f32 1.0, %v3296_v59  ;;  %v2003_v34 = vand.u32 2147483648, %v1991_v52  ;;  %v2001_v10 = vand.u32 2147483647, %v1991_v52 }
 0x4ce   : > { %v2037_v7 = vadd.f32 1.0, %v3298_v5  ;;  %vm1997_vm12 = vweird.f32 %v1991_v52 }
 0x4cf   : > { %3301 = vrcp.f32 %v2013_v6  ;;  %v2025_v13 = vand.u32 2147483648, %v2013_v6  ;;  %v2023_v16 = vand.u32 2147483647, %v2013_v6  ;;  %v2004_v22 = vor.u32 1.1754944e-38, %v2003_v34 }
 0x4d0   : > { %3303 = vrcp.f32 %v2037_v7  ;;  %vm2002_vm15 = vcmp.eq.f32.partialorder %v2001_v10, 8.507059e+37  ;;  %vm2019_vm3 = vweird.f32 %v2013_v6  ;;  %v2049_v53 = vand.u32 2147483648, %v2037_v7 }
 0x4d1   : > { %3305 = vtanh.f32 %v2029_v25  ;;  %v2026_v45 = vor.u32 1.1754944e-38, %v2025_v13  ;;  %vm2024_vm5 = vcmp.eq.f32.partialorder %v2023_v16, 8.507059e+37  ;;  %vm2043_vm7 = vweird.f32 %v2037_v7 }
 0x4d2   : > { %v2047_v42 = vand.u32 2147483647, %v2037_v7  ;;  %v2050_v36 = vor.u32 1.1754944e-38, %v2049_v53 }
 0x4d3   : > { %v3300_v12 = vpop.eup %3299 }
 0x4d4   : > { %v1993_v23 = vmul.f32 %v3300_v12, %v1991_v52  ;;  %vm1998_vm11 = vweird.f32 %v3300_v12  ;;  %vm2048_vm9 = vcmp.eq.f32.partialorder %v2047_v42, 8.507059e+37 }
 0x4d5   : > { %v3302_v24 = vpop.eup %3301  ;;  %vm1999_vm14 = vmor %vm1997_vm12, %vm1998_vm11 }
 0x4d6   : > { %v3304_v26 = vpop.eup %3303  ;;  %v1994_v41 = vsub.f32 1.0, %v1993_v23  ;;  %v2015_v43 = vmul.f32 %v3302_v24, %v2013_v6  ;;  %vm2020_vm13 = vweird.f32 %v3302_v24 }
 0x4d7   : > { %v2039_v0 = vmul.f32 %v3304_v26, %v2037_v7  ;;  %vm2021_vm4 = vmor %vm2019_vm3, %vm2020_vm13  ;;  %v3306_v30 = vpop.eup %3305  ;;  %vm2044_vm6 = vweird.f32 %v3304_v26 }
 0x4d8   : > { %v1995_v1 = vmul.f32 %v3300_v12, %v1994_v41  ;;  %v2016_v9 = vsub.f32 1.0, %v2015_v43  ;;  %vm2045_vm8 = vmor %vm2043_vm7, %vm2044_vm6 }
 0x4d9   : > { %v2040_v21 = vsub.f32 1.0, %v2039_v0 }
 0x4da   : > { %v1996_v11 = vadd.f32 %v3300_v12, %v1995_v1  ;;  %v2017_v19 = vmul.f32 %v3302_v24, %v2016_v9 }
 0x4db   : > { %v2041_v35 = vmul.f32 %v3304_v26, %v2040_v21 }
 0x4dc   : > { %v2000_v18 = vsel %vm1999_vm14, %v3300_v12, %v1996_v11  ;;  %v2018_v33 = vadd.f32 %v3302_v24, %v2017_v19 }
 0x4dd   : > { %v2005_v37 = vsel %vm2002_vm15, %v2004_v22, %v2000_v18  ;;  %v2042_v48 = vadd.f32 %v3304_v26, %v2041_v35 }
 0x4de   : > { %v2022_v47 = vsel %vm2021_vm4, %v3302_v24, %v2018_v33  ;;  %v2054_v31 = vmul.f32 %v3306_v30, %v2005_v37 }
 0x4df   : > { %v2027_v49 = vsel %vm2024_vm5, %v2026_v45, %v2022_v47  ;;  %v2046_v58 = vsel %vm2045_vm8, %v3304_v26, %v2042_v48 }
 0x4e0   : > { %v2053_v57 = vmul.f32 %v2027_v49, %v3940_v46  ;;  %v2051_v63 = vsel %vm2048_vm9, %v2050_v36, %v2046_v58 }
 0x4e2   : > { %v3979_v61 = vadd.f32 %v2054_v31, %v2053_v57 }
 0x4e4   : > { %3307 = vtanh.f32 %v3979_v61 }
 0x4ea   : > { %v3308_v62 = vpop.eup %3307 }
 0x4eb   : > { %v2057_v54 = vmul.f32 %v3308_v62, %v2051_v63 }
 0x4ed   : > { %v2060_v55 = vpack.c.bf16 %v2057_v54, %v2057_v54 }
 0x4ef   : > { %2069 = vmatmul.bf16.vlgmr.msrb.gmra.mxu0 %v2060_v55  ;;  %2082 = vmatmul.bf16.vlgmr.msrb.gmra.mxu1 %v2060_v55 }
 0x4f0   : > { %2095 = vmatmul.bf16.vlgmr.msrb.gmra.mxu2 %v2060_v55  ;;  %2108 = vmatmul.bf16.vlgmr.msrb.gmra.mxu3 %v2060_v55 }
 0x56c   : > { %v2070_v46 = vpop.f32.mrf.mxu0  ;;  %v2083_v56 = vpop.f32.mrf.mxu1 }
 0x56d   : > { %v2117_v60 = vrot.slane %v2083_v56, 7 }
 0x56f   : > { %v2120_v15 = vsel %vm1295_vm0, %v2070_v46, %v2117_v60  ;;  %v2346_v60 = vld [vmem:[%s4083_s4 + $0x70] sm:$0xff] }
 0x573   : > { %v2096_v2 = vpop.f32.mrf.mxu2  ;;  %v2109_v3 = vpop.f32.mrf.mxu3 }
 0x574   : > { %v2118_v4 = vrot.slane %v2096_v2, 6  ;;  %v2119_v8 = vrot.slane %v2109_v3, 5  ;;  %v2072_v14 = vpop.f32.mrf.mxu0  ;;  %v2085_v20 = vpop.f32.mrf.mxu1  ;;  %v2345_v2 = vld [vmem:[%s4083_s4 + $0x68] sm:$0xff]  ;;  %v2344_v3 = vld [vmem:[%s4083_s4 + $0x60] sm:$0xff] }
 0x575   : > { %v2343_v14 = vld [vmem:[%s4083_s4 + $0x58] sm:$0xff]  ;;  %v2342_v20 = vld [vmem:[%s4083_s4 + $0x50] sm:$0xff] }
 0x576   : > { %v2121_v17 = vsel %vm1297_vm1, %v2118_v4, %v2119_v8 }
 0x577   : > { %v2122_v28 = vsel %vm1299_vm2, %v2120_v15, %v2121_v17  ;;  %v2341_v15 = vld [vmem:[%s4083_s4 + $0x48] sm:$0xff] }
 0x578   : > { %v2124_v29 = vadd.f32 %v2122_v28, %v2059_v27  ;;  %v2340_v27 = vld [vmem:[%s4083_s4 + $0x40] sm:$0xff] }
 0x57a   : > { %v3013_v32 = vmul.f32 -1.442695, %v2124_v29  ;;  %v2145_v38 = vrot.slane %v2124_v29, 1  ;;  %v2169_v39 = vrot.slane %v2124_v29, 3  ;;  %v2166_v26 = vrot.slane %v2124_v29, 2 }
 0x57b   : > { %v2098_v40 = vpop.f32.mrf.mxu2  ;;  %v2111_v44 = vpop.f32.mrf.mxu3 }
 0x57c   : > { %3309 = vpow2.f32 %v3013_v32  ;;  %v3014_v50 = vmul.f32 -1.442695, %v2145_v38  ;;  %v3015_v51 = vmul.f32 -1.442695, %v2169_v39  ;;  %v2339_v44 = vld [vmem:[%s4083_s4 + $0x38] sm:$0xff] }
 0x57e   : > { %3311 = vpow2.f32 %v3014_v50 }
 0x57f   : > { %3313 = vpow2.f32 %v3015_v51 }
 0x582   : > { %v3310_v52 = vpop.eup %3309 }
 0x583   : > { %v2128_v59 = vadd.f32 1.0, %v3310_v52  ;;  %v2338_v52 = vld [vmem:[%s4083_s4 + $0x30] sm:$0xff] }
 0x584   : > { %v3312_v5 = vpop.eup %3311 }
 0x585   : > { %v3314_v6 = vpop.eup %3313  ;;  %3315 = vrcp.f32 %v2128_v59  ;;  %v2150_v7 = vadd.f32 1.0, %v3312_v5  ;;  %v2140_v0 = vand.u32 2147483648, %v2128_v59  ;;  %v2138_v9 = vand.u32 2147483647, %v2128_v59 }
 0x586   : > { %v2174_v12 = vadd.f32 1.0, %v3314_v6  ;;  %vm2134_vm11 = vweird.f32 %v2128_v59 }
 0x587   : > { %3317 = vrcp.f32 %v2150_v7  ;;  %v2162_v11 = vand.u32 2147483648, %v2150_v7  ;;  %v2160_v22 = vand.u32 2147483647, %v2150_v7  ;;  %v2141_v21 = vor.u32 1.1754944e-38, %v2140_v0  ;;  %v2335_v0 = vld [vmem:[%s4083_s4 + $0x18] sm:$0xff] }
 0x588   : > { %3319 = vrcp.f32 %v2174_v12  ;;  %vm2139_vm14 = vcmp.eq.f32.partialorder %v2138_v9, 8.507059e+37  ;;  %vm2156_vm15 = vweird.f32 %v2150_v7  ;;  %v2186_v58 = vand.u32 2147483648, %v2174_v12 }
 0x589   : > { %3321 = vtanh.f32 %v2166_v26  ;;  %v2163_v47 = vor.u32 1.1754944e-38, %v2162_v11  ;;  %vm2161_vm4 = vcmp.eq.f32.partialorder %v2160_v22, 8.507059e+37  ;;  %vm2180_vm6 = vweird.f32 %v2174_v12 }
 0x58a   : > { %v2184_v36 = vand.u32 2147483647, %v2174_v12  ;;  %v2187_v63 = vor.u32 1.1754944e-38, %v2186_v58 }
 0x58b   : > { %v3316_v23 = vpop.eup %3315 }
 0x58c   : > { %v2130_v24 = vmul.f32 %v3316_v23, %v2128_v59  ;;  %vm2135_vm10 = vweird.f32 %v3316_v23  ;;  %vm2185_vm8 = vcmp.eq.f32.partialorder %v2184_v36, 8.507059e+37  ;;  %v2196_v59 = vld [vmem:[#allocation2 + $0x7] ss:$8 sm:$0xf] }
 0x58d   : > { %v3318_v25 = vpop.eup %3317  ;;  %vm2136_vm13 = vmor %vm2134_vm11, %vm2135_vm10 }
 0x58e   : > { %v3320_v41 = vpop.eup %3319  ;;  %v2131_v43 = vsub.f32 1.0, %v2130_v24  ;;  %v2152_v34 = vmul.f32 %v3318_v25, %v2150_v7  ;;  %vm2157_vm12 = vweird.f32 %v3318_v25  ;;  %v2337_v7 = vld [vmem:[%s4083_s4 + $0x28] sm:$0xff] }
 0x58f   : > { %v2176_v1 = vmul.f32 %v3320_v41, %v2174_v12  ;;  %vm2158_vm3 = vmor %vm2156_vm15, %vm2157_vm12  ;;  %v3322_v49 = vpop.eup %3321  ;;  %vm2181_vm5 = vweird.f32 %v3320_v41 }
 0x590   : > { %v2132_v10 = vmul.f32 %v3316_v23, %v2131_v43  ;;  %v2153_v13 = vsub.f32 1.0, %v2152_v34  ;;  %vm2182_vm7 = vmor %vm2180_vm6, %vm2181_vm5  ;;  %vm2369_vm5 = vcmask 8192  }
 0x591   : > { %v2177_v18 = vsub.f32 1.0, %v2176_v1  ;;  %v2334_v1 = vld [vmem:[%s4083_s4 + $0x10] sm:$0xff] }
 0x592   : > { %v2133_v19 = vadd.f32 %v3316_v23, %v2132_v10  ;;  %v2154_v16 = vmul.f32 %v3318_v25, %v2153_v13  ;;  %v2333_v10 = vld [vmem:[%s4083_s4 + $0x8] sm:$0xff]  ;;  %v2332_v13 = vld [vmem:[%s4083_s4] sm:$0xff] }
 0x593   : > { %v2178_v57 = vmul.f32 %v3320_v41, %v2177_v18 }
 0x594   : > { %v2137_v33 = vsel %vm2136_vm13, %v3316_v23, %v2133_v19  ;;  %v2155_v37 = vadd.f32 %v3318_v25, %v2154_v16 }
 0x595   : > { %v2142_v45 = vsel %vm2139_vm14, %v2141_v21, %v2137_v33  ;;  %v2179_v42 = vadd.f32 %v3320_v41, %v2178_v57 }
 0x596   : > { %v2159_v30 = vsel %vm2158_vm3, %v3318_v25, %v2155_v37  ;;  %v2191_v48 = vmul.f32 %v3322_v49, %v2142_v45  ;;  %v2336_v25 = vld [vmem:[%s4083_s4 + $0x20] sm:$0xff] }
 0x597   : > { %v2164_v35 = vsel %vm2161_vm4, %v2163_v47, %v2159_v30  ;;  %v2183_v62 = vsel %vm2182_vm7, %v3320_v41, %v2179_v42 }
 0x598   : > { %v2190_v31 = vmul.f32 %v2164_v35, %v3979_v61  ;;  %v2188_v55 = vsel %vm2185_vm8, %v2187_v63, %v2183_v62  ;;  %v2347_v61 = vld [vmem:[%s4083_s4 + $0x78] sm:$0xff] }
 0x599   : > { %2349 = vmatpush.msrb.mxu0 %v2347_v61 }
 0x59a   : > { %v3986_v53 = vadd.f32 %v2191_v48, %v2190_v31 }
 0x59b   : > { %2350 = vmatpush.msrb.mxu0 %v2346_v60 }
 0x59c   : > { %3323 = vtanh.f32 %v3986_v53 }
 0x59d   : > { %2351 = vmatpush.msrb.mxu0 %v2345_v2 }
 0x59f   : > { %2352 = vmatpush.msrb.mxu0 %v2344_v3 }
 0x5a1   : > { %2353 = vmatpush.msrb.mxu0 %v2343_v14 }
 0x5a2   : > { %v3324_v54 = vpop.eup %3323 }
 0x5a3   : > { %v2194_v46 = vmul.f32 %v3324_v54, %v2188_v55  ;;  %2354 = vmatpush.msrb.mxu0 %v2342_v20 }
 0x5a5   : > { %v2197_v56 = vpack.c.bf16 %v2194_v46, %v2194_v46  ;;  %2355 = vmatpush.msrb.mxu0 %v2341_v15 }
 0x5a7   : > { %2206 = vmatmul.bf16.vlgmr.msra.gmra.mxu0 %v2197_v56  ;;  %2219 = vmatmul.bf16.vlgmr.msra.gmra.mxu1 %v2197_v56 }
 0x5a8   : > { %2232 = vmatmul.bf16.vlgmr.msra.gmra.mxu2 %v2197_v56  ;;  %2245 = vmatmul.bf16.vlgmr.msra.gmra.mxu3 %v2197_v56 }
 0x5a9   : > { %2356 = vmatpush.msrb.mxu0 %v2340_v27 }
 0x5ab   : > { %2357 = vmatpush.msrb.mxu0 %v2339_v44 }
 0x5ad   : > { %2358 = vmatpush.msrb.mxu0 %v2338_v52 }
 0x5af   : > { %2359 = vmatpush.msrb.mxu0 %v2337_v7 }
 0x5b1   : > { %2360 = vmatpush.msrb.mxu0 %v2336_v25 }
 0x5b3   : > { %2361 = vmatpush.msrb.mxu0 %v2335_v0 }
 0x5b5   : > { %2362 = vmatpush.msrb.mxu0 %v2334_v1 }
 0x5b7   : > { %2363 = vmatpush.msrb.mxu0 %v2333_v10 }
 0x5b9   : > { %2364 = vmatpush.msrb.mxu0 %v2332_v13 }
 0x624   : > { %v2207_v4 = vpop.f32.mrf.mxu0  ;;  %v2220_v8 = vpop.f32.mrf.mxu1 }
 0x625   : > { %v2254_v17 = vrot.slane %v2220_v8, 7 }
 0x627   : > { %v2257_v50 = vsel %vm1295_vm0, %v2207_v4, %v2254_v17 }
 0x62b   : > { %v2233_v28 = vpop.f32.mrf.mxu2  ;;  %v2246_v29 = vpop.f32.mrf.mxu3 }
 0x62c   : > { %v2255_v32 = vrot.slane %v2233_v28, 6  ;;  %v2256_v38 = vrot.slane %v2246_v29, 5  ;;  %v2209_v39 = vpop.f32.mrf.mxu0  ;;  %v2222_v40 = vpop.f32.mrf.mxu1 }
 0x62e   : > { %v2258_v51 = vsel %vm1297_vm1, %v2255_v32, %v2256_v38 }
 0x62f   : > { %v2259_v5 = vsel %vm1299_vm2, %v2257_v50, %v2258_v51 }
 0x630   : > { %v2261_v6 = vadd.f32 %v2259_v5, %v2196_v59 }
 0x632   : > { %v3016_v12 = vmul.f32 -1.442695, %v2261_v6  ;;  %v2282_v23 = vrot.slane %v2261_v6, 1  ;;  %v2306_v24 = vrot.slane %v2261_v6, 3  ;;  %v2303_v45 = vrot.slane %v2261_v6, 2 }
 0x633   : > { %v2235_v26 = vpop.f32.mrf.mxu2  ;;  %v2248_v41 = vpop.f32.mrf.mxu3 }
 0x634   : > { %3325 = vpow2.f32 %v3016_v12  ;;  %v3017_v43 = vmul.f32 -1.442695, %v2282_v23  ;;  %v3018_v34 = vmul.f32 -1.442695, %v2306_v24 }
 0x636   : > { %3327 = vpow2.f32 %v3017_v43 }
 0x637   : > { %3329 = vpow2.f32 %v3018_v34 }
 0x63a   : > { %v3326_v9 = vpop.eup %3325 }
 0x63b   : > { %v2265_v11 = vadd.f32 1.0, %v3326_v9 }
 0x63c   : > { %v3328_v19 = vpop.eup %3327 }
 0x63d   : > { %v3330_v16 = vpop.eup %3329  ;;  %3331 = vrcp.f32 %v2265_v11  ;;  %v2287_v22 = vadd.f32 1.0, %v3328_v19  ;;  %v2277_v35 = vand.u32 2147483648, %v2265_v11  ;;  %v2275_v48 = vand.u32 2147483647, %v2265_v11 }
 0x63e   : > { %v2311_v21 = vadd.f32 1.0, %v3330_v16  ;;  %vm2271_vm1 = vweird.f32 %v2265_v11 }
 0x63f   : > { %3333 = vrcp.f32 %v2287_v22  ;;  %v2299_v58 = vand.u32 2147483648, %v2287_v22  ;;  %v2297_v63 = vand.u32 2147483647, %v2287_v22  ;;  %v2278_v54 = vor.u32 1.1754944e-38, %v2277_v35 }
 0x640   : > { %3335 = vrcp.f32 %v2311_v21  ;;  %vm2276_vm10 = vcmp.eq.f32.partialorder %v2275_v48, 8.507059e+37  ;;  %vm2293_vm11 = vweird.f32 %v2287_v22  ;;  %v2323_v27 = vand.u32 2147483648, %v2311_v21 }
 0x641   : > { %3337 = vtanh.f32 %v2303_v45  ;;  %v2300_v60 = vor.u32 1.1754944e-38, %v2299_v58  ;;  %vm2298_vm13 = vcmp.eq.f32.partialorder %v2297_v63, 8.507059e+37  ;;  %vm2317_vm15 = vweird.f32 %v2311_v21 }
 0x642   : > { %v2321_v28 = vand.u32 2147483647, %v2311_v21  ;;  %v2324_v32 = vor.u32 1.1754944e-38, %v2323_v27 }
 0x643   : > { %v3332_v18 = vpop.eup %3331 }
 0x644   : > { %v2267_v33 = vmul.f32 %v3332_v18, %v2265_v11  ;;  %vm2272_vm0 = vweird.f32 %v3332_v18  ;;  %vm2322_vm4 = vcmp.eq.f32.partialorder %v2321_v28, 8.507059e+37 }
 0x645   : > { %v3334_v37 = vpop.eup %3333  ;;  %vm2273_vm9 = vmor %vm2271_vm1, %vm2272_vm0 }
 0x646   : > { %v3336_v47 = vpop.eup %3335  ;;  %v2268_v30 = vsub.f32 1.0, %v2267_v33  ;;  %v2289_v49 = vmul.f32 %v3334_v37, %v2287_v22  ;;  %vm2294_vm2 = vweird.f32 %v3334_v37 }
 0x647   : > { %v2313_v57 = vmul.f32 %v3336_v47, %v2311_v21  ;;  %vm2295_vm12 = vmor %vm2293_vm11, %vm2294_vm2  ;;  %v3338_v3 = vpop.eup %3337  ;;  %vm2318_vm14 = vweird.f32 %v3336_v47 }
 0x648   : > { %v2269_v31 = vmul.f32 %v3332_v18, %v2268_v30  ;;  %v2290_v42 = vsub.f32 1.0, %v2289_v49  ;;  %vm2319_vm3 = vmor %vm2317_vm15, %vm2318_vm14 }
 0x649   : > { %v2314_v55 = vsub.f32 1.0, %v2313_v57 }
 0x64a   : > { %v2270_v36 = vadd.f32 %v3332_v18, %v2269_v31  ;;  %v2291_v62 = vmul.f32 %v3334_v37, %v2290_v42 }
 0x64b   : > { %v2315_v8 = vmul.f32 %v3336_v47, %v2314_v55 }
 0x64c   : > { %v2274_v46 = vsel %vm2273_vm9, %v3332_v18, %v2270_v36  ;;  %v2292_v56 = vadd.f32 %v3334_v37, %v2291_v62 }
 0x64d   : > { %v2279_v61 = vsel %vm2276_vm10, %v2278_v54, %v2274_v46  ;;  %v2316_v17 = vadd.f32 %v3336_v47, %v2315_v8 }
 0x64e   : > { %v2296_v2 = vsel %vm2295_vm12, %v3334_v37, %v2292_v56  ;;  %v2328_v20 = vmul.f32 %v3338_v3, %v2279_v61 }
 0x64f   : > { %v2301_v4 = vsel %vm2298_vm13, %v2300_v60, %v2296_v2  ;;  %v2320_v29 = vsel %vm2319_vm3, %v3336_v47, %v2316_v17 }
 0x650   : > { %v2327_v14 = vmul.f32 %v2301_v4, %v3986_v53  ;;  %v2325_v39 = vsel %vm2322_vm4, %v2324_v32, %v2320_v29  ;;  %v2348_v53 = vld [vmem:[%s4084_s5] sm:$0x1] }
 0x652   : > { %v2329_v15 = vadd.f32 %v2328_v20, %v2327_v14 }
 0x654   : > { %3339 = vtanh.f32 %v2329_v15 }
 0x65a   : > { %v3340_v38 = vpop.eup %3339 }
 0x65b   : > { %v2331_v40 = vmul.f32 %v3340_v38, %v2325_v39 }
 0x65d   : > { %2365 = vmatmul.f32.vlgmr.msrb.gmra.mxu0 %v2331_v40 }
 0x6da   : > { %v2366_v44 = vpop.f32.mrf.mxu0 }
 0x6db   : > { %v2367_v50 = vadd.f32 %v2366_v44, %v2348_v53 }
 0x6dd   : > { %v2370_v51 = vsel %vm2369_vm5, %v2367_v50, -inf }
 0x6de   : > { %2371 = vmax.xlane.f32.xlu0 %v2370_v51 }
 0x751   : > { %v2372_v52 = vpop.xlane.xlu0 %2371 }
 0x752   : > { %v2373_v59 = vsub.f32 %v2367_v50, %v2372_v52 }
 0x754   : > { %v2374_v5 = vmul.f32 1.442695, %v2373_v59 }
 0x756   : > { %3341 = vpow2.f32 %v2374_v5 }
 0x75c   : > { %v3342_v6 = vpop.eup %3341 }
 0x75d   : > { %v2376_v7 = vsel %vm2369_vm5, %v3342_v6, 0.0 }
 0x75e   : > { %2377 = vadd.xlane.f32.xlu0 %v2376_v7 }
 0x7d1   : > { %v2378_v12 = vpop.xlane.xlu0 %2377 }
 0x7d2   : > { %3343 = vlog2.f32 %v2378_v12 }
 0x7d8   : > { %v3344_v23 = vpop.eup %3343 }
 0x7d9   : > { %v2380_v24 = vmul.f32 0.6931472, %v3344_v23 }
 0x7db   : > { %v2381_v25 = vadd.f32 %v2380_v24, %v2372_v52 }
 0x7dd   : > { %v2382_v26 = vsub.f32 %v2367_v50, %v2381_v25 }
 0x7df   : > { %2383 = vst.msk [vmem:[%s277_s28] sm:$0x1] %vm2369_vm5, %v2382_v26 }
 0x7e0   : > { %3432 = shalt.err (!%p3429_p8)
}
 0x7e1   : > { %3158 = dma.vmem_to_hbm [thread:$0]  (%p3555_p5), %s2396_s29, 16, %s2398_s9, %s2385_s10  }
 0x7e2 PF: > { %p3175_p9 = scmp.ge.s32.totalorder %s3475_s24, 2  ;;  %s2409_s17 = sand.u32 1, %s3463_s21  }
 0x7e3   : > { %s2410_s18 = scalar_lea.sflag [#allocation5], %s2409_s17 }
 0x7e4   : > { %p3168_p10 = pnand %p3175_p9, %p3559_p6 }
 0x7e6   : > { %p3169_p11 = pneg %p3168_p10 }
 0x7e8   : > { %3458 = dma.done.wait (%p3169_p11), %s2410_s18, 16  }
 0x7e9   : > { %3460 = vsyncadd (%p3169_p11), %s2410_s18, 4294967280  ;;  %p18_p12 = scmp.ge.s32.totalorder %s3542_s27, 4   ;;  %s4089_s21 = smov %s3467_s22 }
 0x7ea   : > { %s4090_s22 = smov %s3471_s23  ;;  %s4091_s23 = smov %s3553_s30 }
 0x7eb   : > { %s4092_s24 = smov %s3542_s27  ;;  %20 = sbr.rel (!%p18_p12) target bundleno = 5 (0x5), region = 95 }
 0x7f0   :  { %2415 = vsyncpa [#allocation4], 1 }
 0x7f1   :  { %2417 = vsyncpa [#allocation4 + $0x1], 1 }
 0x7f2   :  { %2418 = vsyncpa [#allocation7], 1 }
 0x7f3   :  { %2419 = vsyncpa [#allocation5], 1 }
 0x7f4   :  { %2421 = vsyncpa [#allocation5 + $0x1], 1 }

</bundles_post_ra>
